<compile_context>
chip_gen: v5e
topology: v5e:2x2
jax: 0.10.0
libtpu: 0.0.40
codegen_flags: <defaults>
</compile_context>

<pallas_src>
import functools

import jax
import jax.numpy as jnp
from jax import lax
from jax.experimental import pallas as pl
from jax.experimental.pallas import tpu as pltpu


# ----------------------------------------------------------------------------
# Pallas kernel: 2-layer LSTM + output Linear, everything resident in VMEM.
# ----------------------------------------------------------------------------
def _lstm_tagger_kernel(
    x_ref,        # [T, Bp, I]   bf16 concatenated embeddings
    wih0_ref,     # [I, 4H]      bf16  layer-0 input->gates, gate order [i,f,o,g]
    whh0_ref,     # [H, 4H]      bf16  layer-0 hidden->gates
    b0_ref,       # [1, 4H]      f32   layer-0 bias (b_ih + b_hh)
    w1_ref,       # [2H, 4H]     bf16  layer-1 fused [wih1; whh1]
    b1_ref,       # [1, 4H]      f32   layer-1 bias
    wout_ref,     # [H, Cp]      bf16  output projection (lane-padded)
    bout_ref,     # [1, Cp]      f32   output bias (lane-padded)
    out_ref,      # [T, Bp, Cp]  f32   logits (lane-dense)
    hn_ref,       # [2, Bp, H]   f32   final hidden states (per layer)
    cn_ref,       # [2, Bp, H]   f32   final cell states (per layer)
    xproj_ref,    # scratch [T, Bp, 4H] f32
    h1_all_ref,   # scratch [T, Bp, H]  f32
):
    T, Bp, I = x_ref.shape
    H = whh0_ref.shape[0]
    Cp = out_ref.shape[2]

    # ---- (1) Hoisted layer-0 input projection: one batched MXU matmul ----
    xproj_ref[...] = jnp.dot(
        x_ref[...].reshape(T * Bp, I), wih0_ref[...],
        preferred_element_type=jnp.float32,
    ).reshape(T, Bp, 4 * H)

    # ---- (2) Loop-invariant weights; biases pre-broadcast once ----
    whh0 = whh0_ref[...]
    w1 = w1_ref[...]
    b0 = jnp.broadcast_to(b0_ref[...], (Bp, 4 * H))
    b1 = jnp.broadcast_to(b1_ref[...], (Bp, 4 * H))

    def gates_to_hc(gates, c_prev):
        # gate column order is [i, f, o, g]: one contiguous sigmoid over 3H
        # lanes, one tanh over the last H lanes.
        sig = jax.nn.sigmoid(gates[:, : 3 * H])
        i = sig[:, 0 * H:1 * H]
        f = sig[:, 1 * H:2 * H]
        o = sig[:, 2 * H:3 * H]
        g = jnp.tanh(gates[:, 3 * H:])
        c_new = f * c_prev + i * g
        h_new = o * jnp.tanh(c_new)
        return h_new, c_new

    def step(t, carry):
        h0, c0, h1, c1 = carry
        # layer 0: precomputed input projection + recurrent matmul
        g0 = xproj_ref[t] + b0 + jnp.dot(
            h0.astype(jnp.bfloat16), whh0, preferred_element_type=jnp.float32)
        h0n, c0n = gates_to_hc(g0, c0)
        # layer 1: single fused matmul over [h0_new, h1_prev]
        hcat = jnp.concatenate([h0n, h1], axis=1).astype(jnp.bfloat16)
        g1 = jnp.dot(hcat, w1, preferred_element_type=jnp.float32) + b1
        h1n, c1n = gates_to_hc(g1, c1)
        h1_all_ref[t] = h1n
        return (h0n, c0n, h1n, c1n)

    zero = jnp.zeros((Bp, H), jnp.float32)
    # Fully unrolled short recurrence (LLO visibility across timesteps).
    h0, c0, h1, c1 = lax.fori_loop(
        0, T, step, (zero, zero, zero, zero), unroll=True)

    hn_ref[0] = h0
    hn_ref[1] = h1
    cn_ref[0] = c0
    cn_ref[1] = c1

    # ---- (3) Hoisted output projection: one matmul + one lane-dense store ----
    logits = jnp.dot(
        h1_all_ref[...].reshape(T * Bp, H).astype(jnp.bfloat16),
        wout_ref[...], preferred_element_type=jnp.float32)
    out_ref[...] = (logits + bout_ref[...]).reshape(T, Bp, Cp)


def lstm_tagger_pallas(x, params):
    """x: [T, B, I] float32. Returns (logits [T,B,C], h_n [2,B,H], c_n [2,B,H])."""
    T, B, _ = x.shape
    H = params["whh0"].shape[0]
    C = params["wout"].shape[1]

    # ---- Host-side weight prep ----
    # Reorder gate columns from PyTorch's [i, f, g, o] to [i, f, o, g] so the
    # kernel applies one contiguous sigmoid + one tanh.
    def reorder(w):
        i, f, g, o = jnp.split(w, 4, axis=-1)
        return jnp.concatenate([i, f, o, g], axis=-1)

    wih0 = reorder(params["wih0"]).astype(jnp.bfloat16)
    whh0 = reorder(params["whh0"]).astype(jnp.bfloat16)
    b0 = reorder(params["b0"]).astype(jnp.float32)
    # Fuse layer-1 input/hidden weights: [2H, 4H].
    w1 = jnp.concatenate(
        [reorder(params["wih1"]), reorder(params["whh1"])], axis=0
    ).astype(jnp.bfloat16)
    b1 = reorder(params["b1"]).astype(jnp.float32)

    # Pad output class dim to a lane-dense multiple of 128.
    LANES = 128
    Cp = ((C + LANES - 1) // LANES) * LANES
    wout = jnp.zeros((H, Cp), jnp.float32).at[:, :C].set(params["wout"])
    wout = wout.astype(jnp.bfloat16)
    bout = jnp.zeros((1, Cp), jnp.float32).at[:, :C].set(params["bout"])

    # Pad batch to a multiple of 8 sublanes.
    Bp = ((B + 7) // 8) * 8
    x_p = x if Bp == B else jnp.pad(x, ((0, 0), (0, Bp - B), (0, 0)))
    x_p = x_p.astype(jnp.bfloat16)

    out_shape = (
        jax.ShapeDtypeStruct((T, Bp, Cp), jnp.float32),
        jax.ShapeDtypeStruct((2, Bp, H), jnp.float32),
        jax.ShapeDtypeStruct((2, Bp, H), jnp.float32),
    )
    vmem = pl.BlockSpec(memory_space=pltpu.MemorySpace.VMEM)
    fn = pl.pallas_call(
        _lstm_tagger_kernel,
        out_shape=out_shape,
        in_specs=[vmem] * 8,
        out_specs=(vmem, vmem, vmem),
        scratch_shapes=[
            pltpu.VMEM((T, Bp, 4 * H), jnp.float32),   # hoisted x projection
            pltpu.VMEM((T, Bp, H), jnp.float32),       # per-step h1 for out proj
        ],
    )
    logits_p, h_n_p, c_n_p = fn(x_p, wih0, whh0, b0, w1, b1, wout, bout)
    return logits_p[:, :B, :C], h_n_p[:, :B, :], c_n_p[:, :B, :]


# ----------------------------------------------------------------------------
# JAX glue: embedding lookups + concat (PyTorch `forward` up to the LSTM).
# ----------------------------------------------------------------------------
def embed_and_concat(params, char1, char2, char3, type1, type2, type3, word):
    def emb(table, ids):
        e = jnp.take(table, ids, axis=0)          # [T, B, n, dim]
        T, B = ids.shape[0], ids.shape[1]
        return e.reshape(T, B, -1)                # [T, B, n*dim]

    # TODO(synk): embedding dropout omitted (module default dropout=0 / eval).
    feats = [
        emb(params["emb_char1"], char1),
        emb(params["emb_char2"], char2),
        emb(params["emb_char3"], char3),
        emb(params["emb_type1"], type1),
        emb(params["emb_type2"], type2),
        emb(params["emb_type3"], type3),
        emb(params["emb_word"], word),
    ]
    return jnp.concatenate(feats, axis=2)         # [T, B, input_size]


@functools.partial(jax.jit, static_argnames=())
def pos_tagging_rnn_forward(params, char1, char2, char3, type1, type2, type3, word):
    x = embed_and_concat(params, char1, char2, char3, type1, type2, type3, word)
    logits, h_n, c_n = lstm_tagger_pallas(x, params)
    return logits, (h_n, c_n)


# ----------------------------------------------------------------------------
# Pure-JAX references (for correctness checks).
# ----------------------------------------------------------------------------
def _make_ref_forward(use_bf16_matmul):
    """Reference in the standard PyTorch gate order [i, f, g, o].

    use_bf16_matmul=True mirrors the kernel's bf16 matmul operands (f32
    accumulation) so the comparison can be tight; False is a full-f32 sanity
    reference.
    """
    def mm(a, b):
        if use_bf16_matmul:
            return jnp.dot(a.astype(jnp.bfloat16), b.astype(jnp.bfloat16),
                           preferred_element_type=jnp.float32)
        return jnp.dot(a, b, preferred_element_type=jnp.float32)

    def ref(params, x):
        H = params["whh0"].shape[0]

        def cell(x_t, h_prev, c_prev, wih, whh, b):
            gates = mm(x_t, wih) + mm(h_prev, whh) + b
            i = jax.nn.sigmoid(gates[:, 0 * H:1 * H])
            f = jax.nn.sigmoid(gates[:, 1 * H:2 * H])
            g = jnp.tanh(gates[:, 2 * H:3 * H])
            o = jax.nn.sigmoid(gates[:, 3 * H:4 * H])
            c_new = f * c_prev + i * g
            return o * jnp.tanh(c_new), c_new

        B = x.shape[1]
        h0 = c0 = h1 = c1 = jnp.zeros((B, H), jnp.float32)
        outs = []
        for t in range(x.shape[0]):
            h0, c0 = cell(x[t], h0, c0, params["wih0"], params["whh0"], params["b0"])
            h1, c1 = cell(h0, h1, c1, params["wih1"], params["whh1"], params["b1"])
            outs.append(mm(h1, params["wout"]) + params["bout"])
        logits = jnp.stack(outs, axis=0)
        h_n = jnp.stack([h0, h1], axis=0)
        c_n = jnp.stack([c0, c1], axis=0)
        return logits, h_n, c_n

    return ref


# ----------------------------------------------------------------------------
# Deterministic parameter init + example run.
# ----------------------------------------------------------------------------
def init_params(key, num_char1, num_char2, num_char3, char_dim,
                num_chartype1, num_chartype2, num_chartype3, chartype_dim,
                num_word, word_dim, hidden_size, num_classes):
    wsize, ngram = 3, 3
    input_size = word_dim
    for n in range(ngram):
        input_size += char_dim * (wsize * 2 - n)
        input_size += chartype_dim * (wsize * 2 - n)

    keys = jax.random.split(key, 16)
    s = 0.1

    def rnd(k, shape):
        return jax.random.normal(k, shape, jnp.float32) * s

    H = hidden_size
    params = {
        "emb_char1": rnd(keys[0], (num_char1, char_dim)),
        "emb_char2": rnd(keys[1], (num_char2, char_dim)),
        "emb_char3": rnd(keys[2], (num_char3, char_dim)),
        "emb_type1": rnd(keys[3], (num_chartype1, chartype_dim)),
        "emb_type2": rnd(keys[4], (num_chartype2, chartype_dim)),
        "emb_type3": rnd(keys[5], (num_chartype3, chartype_dim)),
        "emb_word":  rnd(keys[6], (num_word, word_dim)),
        # LSTM layer 0 (weights stored as [in, 4H], bias = b_ih + b_hh,
        # PyTorch gate order [i, f, g, o]).
        "wih0": rnd(keys[7], (input_size, 4 * H)),
        "whh0": rnd(keys[8], (H, 4 * H)),
        "b0":   rnd(keys[9], (1, 4 * H)),
        # LSTM layer 1
        "wih1": rnd(keys[10], (H, 4 * H)),
        "whh1": rnd(keys[11], (H, 4 * H)),
        "b1":   rnd(keys[12], (1, 4 * H)),
        # Output Linear
        "wout": rnd(keys[13], (H, num_classes)),
        "bout": rnd(keys[14], (1, num_classes)),
    }
    return params, input_size


if __name__ == "__main__":
    key = jax.random.PRNGKey(0)

    # Small, forward-consistent config.
    num_char1, num_char2, num_char3, char_dim = 50, 60, 70, 8
    num_type1, num_type2, num_type3, chartype_dim = 10, 12, 14, 8
    num_word, word_dim = 100, 16
    hidden_size, num_classes = 32, 16
    T, B = 8, 4

    pkey, ikey = jax.random.split(key)
    params, input_size = init_params(
        pkey, num_char1, num_char2, num_char3, char_dim,
        num_type1, num_type2, num_type3, chartype_dim,
        num_word, word_dim, hidden_size, num_classes)

    iks = jax.random.split(ikey, 7)
    char1 = jax.random.randint(iks[0], (T, B, 6), 0, num_char1)
    char2 = jax.random.randint(iks[1], (T, B, 5), 0, num_char2)
    char3 = jax.random.randint(iks[2], (T, B, 4), 0, num_char3)
    type1 = jax.random.randint(iks[3], (T, B, 6), 0, num_type1)
    type2 = jax.random.randint(iks[4], (T, B, 5), 0, num_type2)
    type3 = jax.random.randint(iks[5], (T, B, 4), 0, num_type3)
    word = jax.random.randint(iks[6], (T, B, 1), 0, num_word)

    logits, (h_n, c_n) = pos_tagging_rnn_forward(
        params, char1, char2, char3, type1, type2, type3, word)
    jax.block_until_ready((logits, h_n, c_n))

    assert logits.shape == (T, B, num_classes)
    assert h_n.shape == (2, B, hidden_size)
    assert c_n.shape == (2, B, hidden_size)

    # Correctness checks.
    x = embed_and_concat(params, char1, char2, char3, type1, type2, type3, word)
    assert x.shape == (T, B, input_size)

    # (a) Tight check against a reference that mirrors the kernel's bf16
    #     matmul operands (f32 accumulation) — catches gate-reorder/layout/
    #     fusion bugs that the old loose 5e-2 tolerance would miss.
    ref_bf16 = _make_ref_forward(use_bf16_matmul=True)
    rl, rh, rc = ref_bf16(params, x)
    assert jnp.allclose(logits, rl, atol=5e-3, rtol=5e-3)
    assert jnp.allclose(h_n, rh, atol=5e-3, rtol=5e-3)
    assert jnp.allclose(c_n, rc, atol=5e-3, rtol=5e-3)

    # (b) Sanity check against the pure-f32 reference (looser: kernel matmuls
    #     intentionally use bf16 operands).
    ref_f32 = _make_ref_forward(use_bf16_matmul=False)
    fl, fh, fc = ref_f32(params, x)
    assert jnp.allclose(logits, fl, atol=3e-2, rtol=3e-2)
    assert jnp.allclose(h_n, fh, atol=3e-2, rtol=3e-2)
    assert jnp.allclose(c_n, fc, atol=3e-2, rtol=3e-2)

    print("KERNEL_OK")
</pallas_src>

<mosaic_0001>
module attributes {stable_mosaic.version = 11 : i64} {
  func.func @_lstm_tagger_kernel(%arg0: memref<8x8x256xbf16, #tpu.memory_space<vmem>>, %arg1: memref<256x128xbf16, #tpu.memory_space<vmem>>, %arg2: memref<32x128xbf16, #tpu.memory_space<vmem>>, %arg3: memref<1x128xf32, #tpu.memory_space<vmem>>, %arg4: memref<64x128xbf16, #tpu.memory_space<vmem>>, %arg5: memref<1x128xf32, #tpu.memory_space<vmem>>, %arg6: memref<32x128xbf16, #tpu.memory_space<vmem>>, %arg7: memref<1x128xf32, #tpu.memory_space<vmem>>, %arg8: memref<8x8x128xf32, #tpu.memory_space<vmem>>, %arg9: memref<2x8x32xf32, #tpu.memory_space<vmem>>, %arg10: memref<2x8x32xf32, #tpu.memory_space<vmem>>, %arg11: memref<8x8x128xf32, #tpu.memory_space<vmem>>, %arg12: memref<8x8x32xf32, #tpu.memory_space<vmem>>) attributes {dimension_semantics = [], scalar_prefetch = 0 : i64, scratch_operands = 2 : i64, tpu.core_type = #tpu.core_type<tc>} {
    %c0 = arith.constant 0 : index
    %c0_0 = arith.constant 0 : index
    %c0_1 = arith.constant 0 : index
    %0 = vector.load %arg0[%c0, %c0_0, %c0_1] : memref<8x8x256xbf16, #tpu.memory_space<vmem>>, vector<8x8x256xbf16>
    %1 = vector.shape_cast %0 : vector<8x8x256xbf16> to vector<64x256xbf16>
    %c0_2 = arith.constant 0 : index
    %c0_3 = arith.constant 0 : index
    %2 = vector.load %arg1[%c0_2, %c0_3] : memref<256x128xbf16, #tpu.memory_space<vmem>>, vector<256x128xbf16>
    %cst = arith.constant dense<0.000000e+00> : vector<64x128xf32>
    %3 = tpu.matmul %1, %2, %cst {dimension_numbers = #tpu.dot_dimension_numbers<[1], [0], [0], [1], [0, 0, 1, 1], [], []>} : vector<64x256xbf16>, vector<256x128xbf16>, vector<64x128xf32> -> vector<64x128xf32>
    %4 = vector.shape_cast %3 : vector<64x128xf32> to vector<8x8x128xf32>
    %c0_4 = arith.constant 0 : index
    %c0_5 = arith.constant 0 : index
    %c0_6 = arith.constant 0 : index
    %5 = vector.load %arg11[%c0_4, %c0_5, %c0_6] : memref<8x8x128xf32, #tpu.memory_space<vmem>>, vector<8x8x128xf32>
    tpu.vector_store %arg11[%c0_4, %c0_5, %c0_6], %4 {strides = array<i32>} : memref<8x8x128xf32, #tpu.memory_space<vmem>>, vector<8x8x128xf32>,
    %c0_7 = arith.constant 0 : index
    %c0_8 = arith.constant 0 : index
    %6 = vector.load %arg2[%c0_7, %c0_8] : memref<32x128xbf16, #tpu.memory_space<vmem>>, vector<32x128xbf16>
    %c0_9 = arith.constant 0 : index
    %c0_10 = arith.constant 0 : index
    %7 = vector.load %arg4[%c0_9, %c0_10] : memref<64x128xbf16, #tpu.memory_space<vmem>>, vector<64x128xbf16>
    %c0_11 = arith.constant 0 : index
    %c0_12 = arith.constant 0 : index
    %8 = vector.load %arg3[%c0_11, %c0_12] : memref<1x128xf32, #tpu.memory_space<vmem>>, vector<1x128xf32>
    %9 = vector.shape_cast %8 : vector<1x128xf32> to vector<1x128xf32>
    %10 = vector.broadcast %9 : vector<1x128xf32> to vector<8x128xf32>
    %c0_13 = arith.constant 0 : index
    %c0_14 = arith.constant 0 : index
    %11 = vector.load %arg5[%c0_13, %c0_14] : memref<1x128xf32, #tpu.memory_space<vmem>>, vector<1x128xf32>
    %12 = vector.shape_cast %11 : vector<1x128xf32> to vector<1x128xf32>
    %13 = vector.broadcast %12 : vector<1x128xf32> to vector<8x128xf32>
    %cst_15 = arith.constant 0.000000e+00 : f32
    %14 = vector.broadcast %cst_15 : f32 to vector<8x32xf32>
    %c0_i32 = arith.constant 0 : i32
    %15 = arith.index_cast %c0_i32 : i32 to index
    %c0_16 = arith.constant 0 : index
    %c0_17 = arith.constant 0 : index
    %16 = vector.load %arg11[%15, %c0_16, %c0_17] : memref<8x8x128xf32, #tpu.memory_space<vmem>>, vector<1x8x128xf32>
    %17 = vector.shape_cast %16 : vector<1x8x128xf32> to vector<8x128xf32>
    %18 = arith.addf %17, %10 : vector<8x128xf32>
    %19 = arith.truncf %14 : vector<8x32xf32> to vector<8x32xbf16>
    %cst_18 = arith.constant dense<0.000000e+00> : vector<8x128xf32>
    %20 = tpu.matmul %19, %6, %cst_18 {dimension_numbers = #tpu.dot_dimension_numbers<[1], [0], [0], [1], [0, 0, 1, 1], [], []>} : vector<8x32xbf16>, vector<32x128xbf16>, vector<8x128xf32> -> vector<8x128xf32>
    %21 = arith.addf %18, %20 : vector<8x128xf32>
    %22 = vector.extract_strided_slice %21 {offsets = [0, 0], sizes = [8, 96], strides = [1, 1]} : vector<8x128xf32> to vector<8x96xf32>
    %23 = arith.negf %22 : vector<8x96xf32>
    %24 = math.exp %23 : vector<8x96xf32>
    %cst_19 = arith.constant 1.000000e+00 : f32
    %25 = vector.broadcast %cst_19 : f32 to vector<8x96xf32>
    %26 = arith.addf %25, %24 : vector<8x96xf32>
    %27 = arith.divf %25, %26 : vector<8x96xf32>
    %28 = vector.extract_strided_slice %27 {offsets = [0, 0], sizes = [8, 32], strides = [1, 1]} : vector<8x96xf32> to vector<8x32xf32>
    %29 = vector.extract_strided_slice %27 {offsets = [0, 32], sizes = [8, 32], strides = [1, 1]} : vector<8x96xf32> to vector<8x32xf32>
    %30 = vector.extract_strided_slice %27 {offsets = [0, 64], sizes = [8, 32], strides = [1, 1]} : vector<8x96xf32> to vector<8x32xf32>
    %31 = vector.extract_strided_slice %21 {offsets = [0, 96], sizes = [8, 32], strides = [1, 1]} : vector<8x128xf32> to vector<8x32xf32>
    %32 = math.tanh %31 : vector<8x32xf32>
    %33 = arith.mulf %29, %14 : vector<8x32xf32>
    %34 = arith.mulf %28, %32 : vector<8x32xf32>
    %35 = arith.addf %33, %34 : vector<8x32xf32>
    %36 = math.tanh %35 : vector<8x32xf32>
    %37 = arith.mulf %30, %36 : vector<8x32xf32>
    %38 = tpu.concatenate %37, %14 in 1 : vector<8x32xf32>, vector<8x32xf32> -> vector<8x64xf32>
    %39 = arith.truncf %38 : vector<8x64xf32> to vector<8x64xbf16>
    %cst_20 = arith.constant dense<0.000000e+00> : vector<8x128xf32>
    %40 = tpu.matmul %39, %7, %cst_20 {dimension_numbers = #tpu.dot_dimension_numbers<[1], [0], [0], [1], [0, 0, 1, 1], [], []>} : vector<8x64xbf16>, vector<64x128xbf16>, vector<8x128xf32> -> vector<8x128xf32>
    %41 = arith.addf %40, %13 : vector<8x128xf32>
    %42 = vector.extract_strided_slice %41 {offsets = [0, 0], sizes = [8, 96], strides = [1, 1]} : vector<8x128xf32> to vector<8x96xf32>
    %43 = arith.negf %42 : vector<8x96xf32>
    %44 = math.exp %43 : vector<8x96xf32>
    %cst_21 = arith.constant 1.000000e+00 : f32
    %45 = vector.broadcast %cst_21 : f32 to vector<8x96xf32>
    %46 = arith.addf %45, %44 : vector<8x96xf32>
    %47 = arith.divf %45, %46 : vector<8x96xf32>
    %48 = vector.extract_strided_slice %47 {offsets = [0, 0], sizes = [8, 32], strides = [1, 1]} : vector<8x96xf32> to vector<8x32xf32>
    %49 = vector.extract_strided_slice %47 {offsets = [0, 32], sizes = [8, 32], strides = [1, 1]} : vector<8x96xf32> to vector<8x32xf32>
    %50 = vector.extract_strided_slice %47 {offsets = [0, 64], sizes = [8, 32], strides = [1, 1]} : vector<8x96xf32> to vector<8x32xf32>
    %51 = vector.extract_strided_slice %41 {offsets = [0, 96], sizes = [8, 32], strides = [1, 1]} : vector<8x128xf32> to vector<8x32xf32>
    %52 = math.tanh %51 : vector<8x32xf32>
    %53 = arith.mulf %49, %14 : vector<8x32xf32>
    %54 = arith.mulf %48, %52 : vector<8x32xf32>
    %55 = arith.addf %53, %54 : vector<8x32xf32>
    %56 = math.tanh %55 : vector<8x32xf32>
    %57 = arith.mulf %50, %56 : vector<8x32xf32>
    %58 = arith.index_cast %c0_i32 : i32 to index
    %c0_22 = arith.constant 0 : index
    %c0_23 = arith.constant 0 : index
    %59 = vector.load %arg12[%58, %c0_22, %c0_23] : memref<8x8x32xf32, #tpu.memory_space<vmem>>, vector<1x8x32xf32>
    %60 = vector.shape_cast %59 : vector<1x8x32xf32> to vector<8x32xf32>
    %61 = vector.shape_cast %57 : vector<8x32xf32> to vector<1x8x32xf32>
    tpu.vector_store %arg12[%58, %c0_22, %c0_23], %61 {strides = array<i32>} : memref<8x8x32xf32, #tpu.memory_space<vmem>>, vector<1x8x32xf32>,
    %c1_i32 = arith.constant 1 : i32
    %62 = arith.index_cast %c1_i32 : i32 to index
    %c0_24 = arith.constant 0 : index
    %c0_25 = arith.constant 0 : index
    %63 = vector.load %arg11[%62, %c0_24, %c0_25] : memref<8x8x128xf32, #tpu.memory_space<vmem>>, vector<1x8x128xf32>
    %64 = vector.shape_cast %63 : vector<1x8x128xf32> to vector<8x128xf32>
    %65 = arith.addf %64, %10 : vector<8x128xf32>
    %66 = arith.truncf %37 : vector<8x32xf32> to vector<8x32xbf16>
    %cst_26 = arith.constant dense<0.000000e+00> : vector<8x128xf32>
    %67 = tpu.matmul %66, %6, %cst_26 {dimension_numbers = #tpu.dot_dimension_numbers<[1], [0], [0], [1], [0, 0, 1, 1], [], []>} : vector<8x32xbf16>, vector<32x128xbf16>, vector<8x128xf32> -> vector<8x128xf32>
    %68 = arith.addf %65, %67 : vector<8x128xf32>
    %69 = vector.extract_strided_slice %68 {offsets = [0, 0], sizes = [8, 96], strides = [1, 1]} : vector<8x128xf32> to vector<8x96xf32>
    %70 = arith.negf %69 : vector<8x96xf32>
    %71 = math.exp %70 : vector<8x96xf32>
    %cst_27 = arith.constant 1.000000e+00 : f32
    %72 = vector.broadcast %cst_27 : f32 to vector<8x96xf32>
    %73 = arith.addf %72, %71 : vector<8x96xf32>
    %74 = arith.divf %72, %73 : vector<8x96xf32>
    %75 = vector.extract_strided_slice %74 {offsets = [0, 0], sizes = [8, 32], strides = [1, 1]} : vector<8x96xf32> to vector<8x32xf32>
    %76 = vector.extract_strided_slice %74 {offsets = [0, 32], sizes = [8, 32], strides = [1, 1]} : vector<8x96xf32> to vector<8x32xf32>
    %77 = vector.extract_strided_slice %74 {offsets = [0, 64], sizes = [8, 32], strides = [1, 1]} : vector<8x96xf32> to vector<8x32xf32>
    %78 = vector.extract_strided_slice %68 {offsets = [0, 96], sizes = [8, 32], strides = [1, 1]} : vector<8x128xf32> to vector<8x32xf32>
    %79 = math.tanh %78 : vector<8x32xf32>
    %80 = arith.mulf %76, %35 : vector<8x32xf32>
    %81 = arith.mulf %75, %79 : vector<8x32xf32>
    %82 = arith.addf %80, %81 : vector<8x32xf32>
    %83 = math.tanh %82 : vector<8x32xf32>
    %84 = arith.mulf %77, %83 : vector<8x32xf32>
    %85 = tpu.concatenate %84, %57 in 1 : vector<8x32xf32>, vector<8x32xf32> -> vector<8x64xf32>
    %86 = arith.truncf %85 : vector<8x64xf32> to vector<8x64xbf16>
    %cst_28 = arith.constant dense<0.000000e+00> : vector<8x128xf32>
    %87 = tpu.matmul %86, %7, %cst_28 {dimension_numbers = #tpu.dot_dimension_numbers<[1], [0], [0], [1], [0, 0, 1, 1], [], []>} : vector<8x64xbf16>, vector<64x128xbf16>, vector<8x128xf32> -> vector<8x128xf32>
    %88 = arith.addf %87, %13 : vector<8x128xf32>
    %89 = vector.extract_strided_slice %88 {offsets = [0, 0], sizes = [8, 96], strides = [1, 1]} : vector<8x128xf32> to vector<8x96xf32>
    %90 = arith.negf %89 : vector<8x96xf32>
    %91 = math.exp %90 : vector<8x96xf32>
    %cst_29 = arith.constant 1.000000e+00 : f32
    %92 = vector.broadcast %cst_29 : f32 to vector<8x96xf32>
    %93 = arith.addf %92, %91 : vector<8x96xf32>
    %94 = arith.divf %92, %93 : vector<8x96xf32>
    %95 = vector.extract_strided_slice %94 {offsets = [0, 0], sizes = [8, 32], strides = [1, 1]} : vector<8x96xf32> to vector<8x32xf32>
    %96 = vector.extract_strided_slice %94 {offsets = [0, 32], sizes = [8, 32], strides = [1, 1]} : vector<8x96xf32> to vector<8x32xf32>
    %97 = vector.extract_strided_slice %94 {offsets = [0, 64], sizes = [8, 32], strides = [1, 1]} : vector<8x96xf32> to vector<8x32xf32>
    %98 = vector.extract_strided_slice %88 {offsets = [0, 96], sizes = [8, 32], strides = [1, 1]} : vector<8x128xf32> to vector<8x32xf32>
    %99 = math.tanh %98 : vector<8x32xf32>
    %100 = arith.mulf %96, %55 : vector<8x32xf32>
    %101 = arith.mulf %95, %99 : vector<8x32xf32>
    %102 = arith.addf %100, %101 : vector<8x32xf32>
    %103 = math.tanh %102 : vector<8x32xf32>
    %104 = arith.mulf %97, %103 : vector<8x32xf32>
    %105 = arith.index_cast %c1_i32 : i32 to index
    %c0_30 = arith.constant 0 : index
    %c0_31 = arith.constant 0 : index
    %106 = vector.load %arg12[%105, %c0_30, %c0_31] : memref<8x8x32xf32, #tpu.memory_space<vmem>>, vector<1x8x32xf32>
    %107 = vector.shape_cast %106 : vector<1x8x32xf32> to vector<8x32xf32>
    %108 = vector.shape_cast %104 : vector<8x32xf32> to vector<1x8x32xf32>
    tpu.vector_store %arg12[%105, %c0_30, %c0_31], %108 {strides = array<i32>} : memref<8x8x32xf32, #tpu.memory_space<vmem>>, vector<1x8x32xf32>,
    %c2_i32 = arith.constant 2 : i32
    %109 = arith.index_cast %c2_i32 : i32 to index
    %c0_32 = arith.constant 0 : index
    %c0_33 = arith.constant 0 : index
    %110 = vector.load %arg11[%109, %c0_32, %c0_33] : memref<8x8x128xf32, #tpu.memory_space<vmem>>, vector<1x8x128xf32>
    %111 = vector.shape_cast %110 : vector<1x8x128xf32> to vector<8x128xf32>
    %112 = arith.addf %111, %10 : vector<8x128xf32>
    %113 = arith.truncf %84 : vector<8x32xf32> to vector<8x32xbf16>
    %cst_34 = arith.constant dense<0.000000e+00> : vector<8x128xf32>
    %114 = tpu.matmul %113, %6, %cst_34 {dimension_numbers = #tpu.dot_dimension_numbers<[1], [0], [0], [1], [0, 0, 1, 1], [], []>} : vector<8x32xbf16>, vector<32x128xbf16>, vector<8x128xf32> -> vector<8x128xf32>
    %115 = arith.addf %112, %114 : vector<8x128xf32>
    %116 = vector.extract_strided_slice %115 {offsets = [0, 0], sizes = [8, 96], strides = [1, 1]} : vector<8x128xf32> to vector<8x96xf32>
    %117 = arith.negf %116 : vector<8x96xf32>
    %118 = math.exp %117 : vector<8x96xf32>
    %cst_35 = arith.constant 1.000000e+00 : f32
    %119 = vector.broadcast %cst_35 : f32 to vector<8x96xf32>
    %120 = arith.addf %119, %118 : vector<8x96xf32>
    %121 = arith.divf %119, %120 : vector<8x96xf32>
    %122 = vector.extract_strided_slice %121 {offsets = [0, 0], sizes = [8, 32], strides = [1, 1]} : vector<8x96xf32> to vector<8x32xf32>
    %123 = vector.extract_strided_slice %121 {offsets = [0, 32], sizes = [8, 32], strides = [1, 1]} : vector<8x96xf32> to vector<8x32xf32>
    %124 = vector.extract_strided_slice %121 {offsets = [0, 64], sizes = [8, 32], strides = [1, 1]} : vector<8x96xf32> to vector<8x32xf32>
    %125 = vector.extract_strided_slice %115 {offsets = [0, 96], sizes = [8, 32], strides = [1, 1]} : vector<8x128xf32> to vector<8x32xf32>
    %126 = math.tanh %125 : vector<8x32xf32>
    %127 = arith.mulf %123, %82 : vector<8x32xf32>
    %128 = arith.mulf %122, %126 : vector<8x32xf32>
    %129 = arith.addf %127, %128 : vector<8x32xf32>
    %130 = math.tanh %129 : vector<8x32xf32>
    %131 = arith.mulf %124, %130 : vector<8x32xf32>
    %132 = tpu.concatenate %131, %104 in 1 : vector<8x32xf32>, vector<8x32xf32> -> vector<8x64xf32>
    %133 = arith.truncf %132 : vector<8x64xf32> to vector<8x64xbf16>
    %cst_36 = arith.constant dense<0.000000e+00> : vector<8x128xf32>
    %134 = tpu.matmul %133, %7, %cst_36 {dimension_numbers = #tpu.dot_dimension_numbers<[1], [0], [0], [1], [0, 0, 1, 1], [], []>} : vector<8x64xbf16>, vector<64x128xbf16>, vector<8x128xf32> -> vector<8x128xf32>
    %135 = arith.addf %134, %13 : vector<8x128xf32>
    %136 = vector.extract_strided_slice %135 {offsets = [0, 0], sizes = [8, 96], strides = [1, 1]} : vector<8x128xf32> to vector<8x96xf32>
    %137 = arith.negf %136 : vector<8x96xf32>
    %138 = math.exp %137 : vector<8x96xf32>
    %cst_37 = arith.constant 1.000000e+00 : f32
    %139 = vector.broadcast %cst_37 : f32 to vector<8x96xf32>
    %140 = arith.addf %139, %138 : vector<8x96xf32>
    %141 = arith.divf %139, %140 : vector<8x96xf32>
    %142 = vector.extract_strided_slice %141 {offsets = [0, 0], sizes = [8, 32], strides = [1, 1]} : vector<8x96xf32> to vector<8x32xf32>
    %143 = vector.extract_strided_slice %141 {offsets = [0, 32], sizes = [8, 32], strides = [1, 1]} : vector<8x96xf32> to vector<8x32xf32>
    %144 = vector.extract_strided_slice %141 {offsets = [0, 64], sizes = [8, 32], strides = [1, 1]} : vector<8x96xf32> to vector<8x32xf32>
    %145 = vector.extract_strided_slice %135 {offsets = [0, 96], sizes = [8, 32], strides = [1, 1]} : vector<8x128xf32> to vector<8x32xf32>
    %146 = math.tanh %145 : vector<8x32xf32>
    %147 = arith.mulf %143, %102 : vector<8x32xf32>
    %148 = arith.mulf %142, %146 : vector<8x32xf32>
    %149 = arith.addf %147, %148 : vector<8x32xf32>
    %150 = math.tanh %149 : vector<8x32xf32>
    %151 = arith.mulf %144, %150 : vector<8x32xf32>
    %152 = arith.index_cast %c2_i32 : i32 to index
    %c0_38 = arith.constant 0 : index
    %c0_39 = arith.constant 0 : index
    %153 = vector.load %arg12[%152, %c0_38, %c0_39] : memref<8x8x32xf32, #tpu.memory_space<vmem>>, vector<1x8x32xf32>
    %154 = vector.shape_cast %153 : vector<1x8x32xf32> to vector<8x32xf32>
    %155 = vector.shape_cast %151 : vector<8x32xf32> to vector<1x8x32xf32>
    tpu.vector_store %arg12[%152, %c0_38, %c0_39], %155 {strides = array<i32>} : memref<8x8x32xf32, #tpu.memory_space<vmem>>, vector<1x8x32xf32>,
    %c3_i32 = arith.constant 3 : i32
    %156 = arith.index_cast %c3_i32 : i32 to index
    %c0_40 = arith.constant 0 : index
    %c0_41 = arith.constant 0 : index
    %157 = vector.load %arg11[%156, %c0_40, %c0_41] : memref<8x8x128xf32, #tpu.memory_space<vmem>>, vector<1x8x128xf32>
    %158 = vector.shape_cast %157 : vector<1x8x128xf32> to vector<8x128xf32>
    %159 = arith.addf %158, %10 : vector<8x128xf32>
    %160 = arith.truncf %131 : vector<8x32xf32> to vector<8x32xbf16>
    %cst_42 = arith.constant dense<0.000000e+00> : vector<8x128xf32>
    %161 = tpu.matmul %160, %6, %cst_42 {dimension_numbers = #tpu.dot_dimension_numbers<[1], [0], [0], [1], [0, 0, 1, 1], [], []>} : vector<8x32xbf16>, vector<32x128xbf16>, vector<8x128xf32> -> vector<8x128xf32>
    %162 = arith.addf %159, %161 : vector<8x128xf32>
    %163 = vector.extract_strided_slice %162 {offsets = [0, 0], sizes = [8, 96], strides = [1, 1]} : vector<8x128xf32> to vector<8x96xf32>
    %164 = arith.negf %163 : vector<8x96xf32>
    %165 = math.exp %164 : vector<8x96xf32>
    %cst_43 = arith.constant 1.000000e+00 : f32
    %166 = vector.broadcast %cst_43 : f32 to vector<8x96xf32>
    %167 = arith.addf %166, %165 : vector<8x96xf32>
    %168 = arith.divf %166, %167 : vector<8x96xf32>
    %169 = vector.extract_strided_slice %168 {offsets = [0, 0], sizes = [8, 32], strides = [1, 1]} : vector<8x96xf32> to vector<8x32xf32>
    %170 = vector.extract_strided_slice %168 {offsets = [0, 32], sizes = [8, 32], strides = [1, 1]} : vector<8x96xf32> to vector<8x32xf32>
    %171 = vector.extract_strided_slice %168 {offsets = [0, 64], sizes = [8, 32], strides = [1, 1]} : vector<8x96xf32> to vector<8x32xf32>
    %172 = vector.extract_strided_slice %162 {offsets = [0, 96], sizes = [8, 32], strides = [1, 1]} : vector<8x128xf32> to vector<8x32xf32>
    %173 = math.tanh %172 : vector<8x32xf32>
    %174 = arith.mulf %170, %129 : vector<8x32xf32>
    %175 = arith.mulf %169, %173 : vector<8x32xf32>
    %176 = arith.addf %174, %175 : vector<8x32xf32>
    %177 = math.tanh %176 : vector<8x32xf32>
    %178 = arith.mulf %171, %177 : vector<8x32xf32>
    %179 = tpu.concatenate %178, %151 in 1 : vector<8x32xf32>, vector<8x32xf32> -> vector<8x64xf32>
    %180 = arith.truncf %179 : vector<8x64xf32> to vector<8x64xbf16>
    %cst_44 = arith.constant dense<0.000000e+00> : vector<8x128xf32>
    %181 = tpu.matmul %180, %7, %cst_44 {dimension_numbers = #tpu.dot_dimension_numbers<[1], [0], [0], [1], [0, 0, 1, 1], [], []>} : vector<8x64xbf16>, vector<64x128xbf16>, vector<8x128xf32> -> vector<8x128xf32>
    %182 = arith.addf %181, %13 : vector<8x128xf32>
    %183 = vector.extract_strided_slice %182 {offsets = [0, 0], sizes = [8, 96], strides = [1, 1]} : vector<8x128xf32> to vector<8x96xf32>
    %184 = arith.negf %183 : vector<8x96xf32>
    %185 = math.exp %184 : vector<8x96xf32>
    %cst_45 = arith.constant 1.000000e+00 : f32
    %186 = vector.broadcast %cst_45 : f32 to vector<8x96xf32>
    %187 = arith.addf %186, %185 : vector<8x96xf32>
    %188 = arith.divf %186, %187 : vector<8x96xf32>
    %189 = vector.extract_strided_slice %188 {offsets = [0, 0], sizes = [8, 32], strides = [1, 1]} : vector<8x96xf32> to vector<8x32xf32>
    %190 = vector.extract_strided_slice %188 {offsets = [0, 32], sizes = [8, 32], strides = [1, 1]} : vector<8x96xf32> to vector<8x32xf32>
    %191 = vector.extract_strided_slice %188 {offsets = [0, 64], sizes = [8, 32], strides = [1, 1]} : vector<8x96xf32> to vector<8x32xf32>
    %192 = vector.extract_strided_slice %182 {offsets = [0, 96], sizes = [8, 32], strides = [1, 1]} : vector<8x128xf32> to vector<8x32xf32>
    %193 = math.tanh %192 : vector<8x32xf32>
    %194 = arith.mulf %190, %149 : vector<8x32xf32>
    %195 = arith.mulf %189, %193 : vector<8x32xf32>
    %196 = arith.addf %194, %195 : vector<8x32xf32>
    %197 = math.tanh %196 : vector<8x32xf32>
    %198 = arith.mulf %191, %197 : vector<8x32xf32>
    %199 = arith.index_cast %c3_i32 : i32 to index
    %c0_46 = arith.constant 0 : index
    %c0_47 = arith.constant 0 : index
    %200 = vector.load %arg12[%199, %c0_46, %c0_47] : memref<8x8x32xf32, #tpu.memory_space<vmem>>, vector<1x8x32xf32>
    %201 = vector.shape_cast %200 : vector<1x8x32xf32> to vector<8x32xf32>
    %202 = vector.shape_cast %198 : vector<8x32xf32> to vector<1x8x32xf32>
    tpu.vector_store %arg12[%199, %c0_46, %c0_47], %202 {strides = array<i32>} : memref<8x8x32xf32, #tpu.memory_space<vmem>>, vector<1x8x32xf32>,
    %c4_i32 = arith.constant 4 : i32
    %203 = arith.index_cast %c4_i32 : i32 to index
    %c0_48 = arith.constant 0 : index
    %c0_49 = arith.constant 0 : index
    %204 = vector.load %arg11[%203, %c0_48, %c0_49] : memref<8x8x128xf32, #tpu.memory_space<vmem>>, vector<1x8x128xf32>
    %205 = vector.shape_cast %204 : vector<1x8x128xf32> to vector<8x128xf32>
    %206 = arith.addf %205, %10 : vector<8x128xf32>
    %207 = arith.truncf %178 : vector<8x32xf32> to vector<8x32xbf16>
    %cst_50 = arith.constant dense<0.000000e+00> : vector<8x128xf32>
    %208 = tpu.matmul %207, %6, %cst_50 {dimension_numbers = #tpu.dot_dimension_numbers<[1], [0], [0], [1], [0, 0, 1, 1], [], []>} : vector<8x32xbf16>, vector<32x128xbf16>, vector<8x128xf32> -> vector<8x128xf32>
    %209 = arith.addf %206, %208 : vector<8x128xf32>
    %210 = vector.extract_strided_slice %209 {offsets = [0, 0], sizes = [8, 96], strides = [1, 1]} : vector<8x128xf32> to vector<8x96xf32>
    %211 = arith.negf %210 : vector<8x96xf32>
    %212 = math.exp %211 : vector<8x96xf32>
    %cst_51 = arith.constant 1.000000e+00 : f32
    %213 = vector.broadcast %cst_51 : f32 to vector<8x96xf32>
    %214 = arith.addf %213, %212 : vector<8x96xf32>
    %215 = arith.divf %213, %214 : vector<8x96xf32>
    %216 = vector.extract_strided_slice %215 {offsets = [0, 0], sizes = [8, 32], strides = [1, 1]} : vector<8x96xf32> to vector<8x32xf32>
    %217 = vector.extract_strided_slice %215 {offsets = [0, 32], sizes = [8, 32], strides = [1, 1]} : vector<8x96xf32> to vector<8x32xf32>
    %218 = vector.extract_strided_slice %215 {offsets = [0, 64], sizes = [8, 32], strides = [1, 1]} : vector<8x96xf32> to vector<8x32xf32>
    %219 = vector.extract_strided_slice %209 {offsets = [0, 96], sizes = [8, 32], strides = [1, 1]} : vector<8x128xf32> to vector<8x32xf32>
    %220 = math.tanh %219 : vector<8x32xf32>
    %221 = arith.mulf %217, %176 : vector<8x32xf32>
    %222 = arith.mulf %216, %220 : vector<8x32xf32>
    %223 = arith.addf %221, %222 : vector<8x32xf32>
    %224 = math.tanh %223 : vector<8x32xf32>
    %225 = arith.mulf %218, %224 : vector<8x32xf32>
    %226 = tpu.concatenate %225, %198 in 1 : vector<8x32xf32>, vector<8x32xf32> -> vector<8x64xf32>
    %227 = arith.truncf %226 : vector<8x64xf32> to vector<8x64xbf16>
    %cst_52 = arith.constant dense<0.000000e+00> : vector<8x128xf32>
    %228 = tpu.matmul %227, %7, %cst_52 {dimension_numbers = #tpu.dot_dimension_numbers<[1], [0], [0], [1], [0, 0, 1, 1], [], []>} : vector<8x64xbf16>, vector<64x128xbf16>, vector<8x128xf32> -> vector<8x128xf32>
    %229 = arith.addf %228, %13 : vector<8x128xf32>
    %230 = vector.extract_strided_slice %229 {offsets = [0, 0], sizes = [8, 96], strides = [1, 1]} : vector<8x128xf32> to vector<8x96xf32>
    %231 = arith.negf %230 : vector<8x96xf32>
    %232 = math.exp %231 : vector<8x96xf32>
    %cst_53 = arith.constant 1.000000e+00 : f32
    %233 = vector.broadcast %cst_53 : f32 to vector<8x96xf32>
    %234 = arith.addf %233, %232 : vector<8x96xf32>
    %235 = arith.divf %233, %234 : vector<8x96xf32>
    %236 = vector.extract_strided_slice %235 {offsets = [0, 0], sizes = [8, 32], strides = [1, 1]} : vector<8x96xf32> to vector<8x32xf32>
    %237 = vector.extract_strided_slice %235 {offsets = [0, 32], sizes = [8, 32], strides = [1, 1]} : vector<8x96xf32> to vector<8x32xf32>
    %238 = vector.extract_strided_slice %235 {offsets = [0, 64], sizes = [8, 32], strides = [1, 1]} : vector<8x96xf32> to vector<8x32xf32>
    %239 = vector.extract_strided_slice %229 {offsets = [0, 96], sizes = [8, 32], strides = [1, 1]} : vector<8x128xf32> to vector<8x32xf32>
    %240 = math.tanh %239 : vector<8x32xf32>
    %241 = arith.mulf %237, %196 : vector<8x32xf32>
    %242 = arith.mulf %236, %240 : vector<8x32xf32>
    %243 = arith.addf %241, %242 : vector<8x32xf32>
    %244 = math.tanh %243 : vector<8x32xf32>
    %245 = arith.mulf %238, %244 : vector<8x32xf32>
    %246 = arith.index_cast %c4_i32 : i32 to index
    %c0_54 = arith.constant 0 : index
    %c0_55 = arith.constant 0 : index
    %247 = vector.load %arg12[%246, %c0_54, %c0_55] : memref<8x8x32xf32, #tpu.memory_space<vmem>>, vector<1x8x32xf32>
    %248 = vector.shape_cast %247 : vector<1x8x32xf32> to vector<8x32xf32>
    %249 = vector.shape_cast %245 : vector<8x32xf32> to vector<1x8x32xf32>
    tpu.vector_store %arg12[%246, %c0_54, %c0_55], %249 {strides = array<i32>} : memref<8x8x32xf32, #tpu.memory_space<vmem>>, vector<1x8x32xf32>,
    %c5_i32 = arith.constant 5 : i32
    %250 = arith.index_cast %c5_i32 : i32 to index
    %c0_56 = arith.constant 0 : index
    %c0_57 = arith.constant 0 : index
    %251 = vector.load %arg11[%250, %c0_56, %c0_57] : memref<8x8x128xf32, #tpu.memory_space<vmem>>, vector<1x8x128xf32>
    %252 = vector.shape_cast %251 : vector<1x8x128xf32> to vector<8x128xf32>
    %253 = arith.addf %252, %10 : vector<8x128xf32>
    %254 = arith.truncf %225 : vector<8x32xf32> to vector<8x32xbf16>
    %cst_58 = arith.constant dense<0.000000e+00> : vector<8x128xf32>
    %255 = tpu.matmul %254, %6, %cst_58 {dimension_numbers = #tpu.dot_dimension_numbers<[1], [0], [0], [1], [0, 0, 1, 1], [], []>} : vector<8x32xbf16>, vector<32x128xbf16>, vector<8x128xf32> -> vector<8x128xf32>
    %256 = arith.addf %253, %255 : vector<8x128xf32>
    %257 = vector.extract_strided_slice %256 {offsets = [0, 0], sizes = [8, 96], strides = [1, 1]} : vector<8x128xf32> to vector<8x96xf32>
    %258 = arith.negf %257 : vector<8x96xf32>
    %259 = math.exp %258 : vector<8x96xf32>
    %cst_59 = arith.constant 1.000000e+00 : f32
    %260 = vector.broadcast %cst_59 : f32 to vector<8x96xf32>
    %261 = arith.addf %260, %259 : vector<8x96xf32>
    %262 = arith.divf %260, %261 : vector<8x96xf32>
    %263 = vector.extract_strided_slice %262 {offsets = [0, 0], sizes = [8, 32], strides = [1, 1]} : vector<8x96xf32> to vector<8x32xf32>
    %264 = vector.extract_strided_slice %262 {offsets = [0, 32], sizes = [8, 32], strides = [1, 1]} : vector<8x96xf32> to vector<8x32xf32>
    %265 = vector.extract_strided_slice %262 {offsets = [0, 64], sizes = [8, 32], strides = [1, 1]} : vector<8x96xf32> to vector<8x32xf32>
    %266 = vector.extract_strided_slice %256 {offsets = [0, 96], sizes = [8, 32], strides = [1, 1]} : vector<8x128xf32> to vector<8x32xf32>
    %267 = math.tanh %266 : vector<8x32xf32>
    %268 = arith.mulf %264, %223 : vector<8x32xf32>
    %269 = arith.mulf %263, %267 : vector<8x32xf32>
    %270 = arith.addf %268, %269 : vector<8x32xf32>
    %271 = math.tanh %270 : vector<8x32xf32>
    %272 = arith.mulf %265, %271 : vector<8x32xf32>
    %273 = tpu.concatenate %272, %245 in 1 : vector<8x32xf32>, vector<8x32xf32> -> vector<8x64xf32>
    %274 = arith.truncf %273 : vector<8x64xf32> to vector<8x64xbf16>
    %cst_60 = arith.constant dense<0.000000e+00> : vector<8x128xf32>
    %275 = tpu.matmul %274, %7, %cst_60 {dimension_numbers = #tpu.dot_dimension_numbers<[1], [0], [0], [1], [0, 0, 1, 1], [], []>} : vector<8x64xbf16>, vector<64x128xbf16>, vector<8x128xf32> -> vector<8x128xf32>
    %276 = arith.addf %275, %13 : vector<8x128xf32>
    %277 = vector.extract_strided_slice %276 {offsets = [0, 0], sizes = [8, 96], strides = [1, 1]} : vector<8x128xf32> to vector<8x96xf32>
    %278 = arith.negf %277 : vector<8x96xf32>
    %279 = math.exp %278 : vector<8x96xf32>
    %cst_61 = arith.constant 1.000000e+00 : f32
    %280 = vector.broadcast %cst_61 : f32 to vector<8x96xf32>
    %281 = arith.addf %280, %279 : vector<8x96xf32>
    %282 = arith.divf %280, %281 : vector<8x96xf32>
    %283 = vector.extract_strided_slice %282 {offsets = [0, 0], sizes = [8, 32], strides = [1, 1]} : vector<8x96xf32> to vector<8x32xf32>
    %284 = vector.extract_strided_slice %282 {offsets = [0, 32], sizes = [8, 32], strides = [1, 1]} : vector<8x96xf32> to vector<8x32xf32>
    %285 = vector.extract_strided_slice %282 {offsets = [0, 64], sizes = [8, 32], strides = [1, 1]} : vector<8x96xf32> to vector<8x32xf32>
    %286 = vector.extract_strided_slice %276 {offsets = [0, 96], sizes = [8, 32], strides = [1, 1]} : vector<8x128xf32> to vector<8x32xf32>
    %287 = math.tanh %286 : vector<8x32xf32>
    %288 = arith.mulf %284, %243 : vector<8x32xf32>
    %289 = arith.mulf %283, %287 : vector<8x32xf32>
    %290 = arith.addf %288, %289 : vector<8x32xf32>
    %291 = math.tanh %290 : vector<8x32xf32>
    %292 = arith.mulf %285, %291 : vector<8x32xf32>
    %293 = arith.index_cast %c5_i32 : i32 to index
    %c0_62 = arith.constant 0 : index
    %c0_63 = arith.constant 0 : index
    %294 = vector.load %arg12[%293, %c0_62, %c0_63] : memref<8x8x32xf32, #tpu.memory_space<vmem>>, vector<1x8x32xf32>
    %295 = vector.shape_cast %294 : vector<1x8x32xf32> to vector<8x32xf32>
    %296 = vector.shape_cast %292 : vector<8x32xf32> to vector<1x8x32xf32>
    tpu.vector_store %arg12[%293, %c0_62, %c0_63], %296 {strides = array<i32>} : memref<8x8x32xf32, #tpu.memory_space<vmem>>, vector<1x8x32xf32>,
    %c6_i32 = arith.constant 6 : i32
    %297 = arith.index_cast %c6_i32 : i32 to index
    %c0_64 = arith.constant 0 : index
    %c0_65 = arith.constant 0 : index
    %298 = vector.load %arg11[%297, %c0_64, %c0_65] : memref<8x8x128xf32, #tpu.memory_space<vmem>>, vector<1x8x128xf32>
    %299 = vector.shape_cast %298 : vector<1x8x128xf32> to vector<8x128xf32>
    %300 = arith.addf %299, %10 : vector<8x128xf32>
    %301 = arith.truncf %272 : vector<8x32xf32> to vector<8x32xbf16>
    %cst_66 = arith.constant dense<0.000000e+00> : vector<8x128xf32>
    %302 = tpu.matmul %301, %6, %cst_66 {dimension_numbers = #tpu.dot_dimension_numbers<[1], [0], [0], [1], [0, 0, 1, 1], [], []>} : vector<8x32xbf16>, vector<32x128xbf16>, vector<8x128xf32> -> vector<8x128xf32>
    %303 = arith.addf %300, %302 : vector<8x128xf32>
    %304 = vector.extract_strided_slice %303 {offsets = [0, 0], sizes = [8, 96], strides = [1, 1]} : vector<8x128xf32> to vector<8x96xf32>
    %305 = arith.negf %304 : vector<8x96xf32>
    %306 = math.exp %305 : vector<8x96xf32>
    %cst_67 = arith.constant 1.000000e+00 : f32
    %307 = vector.broadcast %cst_67 : f32 to vector<8x96xf32>
    %308 = arith.addf %307, %306 : vector<8x96xf32>
    %309 = arith.divf %307, %308 : vector<8x96xf32>
    %310 = vector.extract_strided_slice %309 {offsets = [0, 0], sizes = [8, 32], strides = [1, 1]} : vector<8x96xf32> to vector<8x32xf32>
    %311 = vector.extract_strided_slice %309 {offsets = [0, 32], sizes = [8, 32], strides = [1, 1]} : vector<8x96xf32> to vector<8x32xf32>
    %312 = vector.extract_strided_slice %309 {offsets = [0, 64], sizes = [8, 32], strides = [1, 1]} : vector<8x96xf32> to vector<8x32xf32>
    %313 = vector.extract_strided_slice %303 {offsets = [0, 96], sizes = [8, 32], strides = [1, 1]} : vector<8x128xf32> to vector<8x32xf32>
    %314 = math.tanh %313 : vector<8x32xf32>
    %315 = arith.mulf %311, %270 : vector<8x32xf32>
    %316 = arith.mulf %310, %314 : vector<8x32xf32>
    %317 = arith.addf %315, %316 : vector<8x32xf32>
    %318 = math.tanh %317 : vector<8x32xf32>
    %319 = arith.mulf %312, %318 : vector<8x32xf32>
    %320 = tpu.concatenate %319, %292 in 1 : vector<8x32xf32>, vector<8x32xf32> -> vector<8x64xf32>
    %321 = arith.truncf %320 : vector<8x64xf32> to vector<8x64xbf16>
    %cst_68 = arith.constant dense<0.000000e+00> : vector<8x128xf32>
    %322 = tpu.matmul %321, %7, %cst_68 {dimension_numbers = #tpu.dot_dimension_numbers<[1], [0], [0], [1], [0, 0, 1, 1], [], []>} : vector<8x64xbf16>, vector<64x128xbf16>, vector<8x128xf32> -> vector<8x128xf32>
    %323 = arith.addf %322, %13 : vector<8x128xf32>
    %324 = vector.extract_strided_slice %323 {offsets = [0, 0], sizes = [8, 96], strides = [1, 1]} : vector<8x128xf32> to vector<8x96xf32>
    %325 = arith.negf %324 : vector<8x96xf32>
    %326 = math.exp %325 : vector<8x96xf32>
    %cst_69 = arith.constant 1.000000e+00 : f32
    %327 = vector.broadcast %cst_69 : f32 to vector<8x96xf32>
    %328 = arith.addf %327, %326 : vector<8x96xf32>
    %329 = arith.divf %327, %328 : vector<8x96xf32>
    %330 = vector.extract_strided_slice %329 {offsets = [0, 0], sizes = [8, 32], strides = [1, 1]} : vector<8x96xf32> to vector<8x32xf32>
    %331 = vector.extract_strided_slice %329 {offsets = [0, 32], sizes = [8, 32], strides = [1, 1]} : vector<8x96xf32> to vector<8x32xf32>
    %332 = vector.extract_strided_slice %329 {offsets = [0, 64], sizes = [8, 32], strides = [1, 1]} : vector<8x96xf32> to vector<8x32xf32>
    %333 = vector.extract_strided_slice %323 {offsets = [0, 96], sizes = [8, 32], strides = [1, 1]} : vector<8x128xf32> to vector<8x32xf32>
    %334 = math.tanh %333 : vector<8x32xf32>
    %335 = arith.mulf %331, %290 : vector<8x32xf32>
    %336 = arith.mulf %330, %334 : vector<8x32xf32>
    %337 = arith.addf %335, %336 : vector<8x32xf32>
    %338 = math.tanh %337 : vector<8x32xf32>
    %339 = arith.mulf %332, %338 : vector<8x32xf32>
    %340 = arith.index_cast %c6_i32 : i32 to index
    %c0_70 = arith.constant 0 : index
    %c0_71 = arith.constant 0 : index
    %341 = vector.load %arg12[%340, %c0_70, %c0_71] : memref<8x8x32xf32, #tpu.memory_space<vmem>>, vector<1x8x32xf32>
    %342 = vector.shape_cast %341 : vector<1x8x32xf32> to vector<8x32xf32>
    %343 = vector.shape_cast %339 : vector<8x32xf32> to vector<1x8x32xf32>
    tpu.vector_store %arg12[%340, %c0_70, %c0_71], %343 {strides = array<i32>} : memref<8x8x32xf32, #tpu.memory_space<vmem>>, vector<1x8x32xf32>,
    %c7_i32 = arith.constant 7 : i32
    %344 = arith.index_cast %c7_i32 : i32 to index
    %c0_72 = arith.constant 0 : index
    %c0_73 = arith.constant 0 : index
    %345 = vector.load %arg11[%344, %c0_72, %c0_73] : memref<8x8x128xf32, #tpu.memory_space<vmem>>, vector<1x8x128xf32>
    %346 = vector.shape_cast %345 : vector<1x8x128xf32> to vector<8x128xf32>
    %347 = arith.addf %346, %10 : vector<8x128xf32>
    %348 = arith.truncf %319 : vector<8x32xf32> to vector<8x32xbf16>
    %cst_74 = arith.constant dense<0.000000e+00> : vector<8x128xf32>
    %349 = tpu.matmul %348, %6, %cst_74 {dimension_numbers = #tpu.dot_dimension_numbers<[1], [0], [0], [1], [0, 0, 1, 1], [], []>} : vector<8x32xbf16>, vector<32x128xbf16>, vector<8x128xf32> -> vector<8x128xf32>
    %350 = arith.addf %347, %349 : vector<8x128xf32>
    %351 = vector.extract_strided_slice %350 {offsets = [0, 0], sizes = [8, 96], strides = [1, 1]} : vector<8x128xf32> to vector<8x96xf32>
    %352 = arith.negf %351 : vector<8x96xf32>
    %353 = math.exp %352 : vector<8x96xf32>
    %cst_75 = arith.constant 1.000000e+00 : f32
    %354 = vector.broadcast %cst_75 : f32 to vector<8x96xf32>
    %355 = arith.addf %354, %353 : vector<8x96xf32>
    %356 = arith.divf %354, %355 : vector<8x96xf32>
    %357 = vector.extract_strided_slice %356 {offsets = [0, 0], sizes = [8, 32], strides = [1, 1]} : vector<8x96xf32> to vector<8x32xf32>
    %358 = vector.extract_strided_slice %356 {offsets = [0, 32], sizes = [8, 32], strides = [1, 1]} : vector<8x96xf32> to vector<8x32xf32>
    %359 = vector.extract_strided_slice %356 {offsets = [0, 64], sizes = [8, 32], strides = [1, 1]} : vector<8x96xf32> to vector<8x32xf32>
    %360 = vector.extract_strided_slice %350 {offsets = [0, 96], sizes = [8, 32], strides = [1, 1]} : vector<8x128xf32> to vector<8x32xf32>
    %361 = math.tanh %360 : vector<8x32xf32>
    %362 = arith.mulf %358, %317 : vector<8x32xf32>
    %363 = arith.mulf %357, %361 : vector<8x32xf32>
    %364 = arith.addf %362, %363 : vector<8x32xf32>
    %365 = math.tanh %364 : vector<8x32xf32>
    %366 = arith.mulf %359, %365 : vector<8x32xf32>
    %367 = tpu.concatenate %366, %339 in 1 : vector<8x32xf32>, vector<8x32xf32> -> vector<8x64xf32>
    %368 = arith.truncf %367 : vector<8x64xf32> to vector<8x64xbf16>
    %cst_76 = arith.constant dense<0.000000e+00> : vector<8x128xf32>
    %369 = tpu.matmul %368, %7, %cst_76 {dimension_numbers = #tpu.dot_dimension_numbers<[1], [0], [0], [1], [0, 0, 1, 1], [], []>} : vector<8x64xbf16>, vector<64x128xbf16>, vector<8x128xf32> -> vector<8x128xf32>
    %370 = arith.addf %369, %13 : vector<8x128xf32>
    %371 = vector.extract_strided_slice %370 {offsets = [0, 0], sizes = [8, 96], strides = [1, 1]} : vector<8x128xf32> to vector<8x96xf32>
    %372 = arith.negf %371 : vector<8x96xf32>
    %373 = math.exp %372 : vector<8x96xf32>
    %cst_77 = arith.constant 1.000000e+00 : f32
    %374 = vector.broadcast %cst_77 : f32 to vector<8x96xf32>
    %375 = arith.addf %374, %373 : vector<8x96xf32>
    %376 = arith.divf %374, %375 : vector<8x96xf32>
    %377 = vector.extract_strided_slice %376 {offsets = [0, 0], sizes = [8, 32], strides = [1, 1]} : vector<8x96xf32> to vector<8x32xf32>
    %378 = vector.extract_strided_slice %376 {offsets = [0, 32], sizes = [8, 32], strides = [1, 1]} : vector<8x96xf32> to vector<8x32xf32>
    %379 = vector.extract_strided_slice %376 {offsets = [0, 64], sizes = [8, 32], strides = [1, 1]} : vector<8x96xf32> to vector<8x32xf32>
    %380 = vector.extract_strided_slice %370 {offsets = [0, 96], sizes = [8, 32], strides = [1, 1]} : vector<8x128xf32> to vector<8x32xf32>
    %381 = math.tanh %380 : vector<8x32xf32>
    %382 = arith.mulf %378, %337 : vector<8x32xf32>
    %383 = arith.mulf %377, %381 : vector<8x32xf32>
    %384 = arith.addf %382, %383 : vector<8x32xf32>
    %385 = math.tanh %384 : vector<8x32xf32>
    %386 = arith.mulf %379, %385 : vector<8x32xf32>
    %387 = arith.index_cast %c7_i32 : i32 to index
    %c0_78 = arith.constant 0 : index
    %c0_79 = arith.constant 0 : index
    %388 = vector.load %arg12[%387, %c0_78, %c0_79] : memref<8x8x32xf32, #tpu.memory_space<vmem>>, vector<1x8x32xf32>
    %389 = vector.shape_cast %388 : vector<1x8x32xf32> to vector<8x32xf32>
    %390 = vector.shape_cast %386 : vector<8x32xf32> to vector<1x8x32xf32>
    tpu.vector_store %arg12[%387, %c0_78, %c0_79], %390 {strides = array<i32>} : memref<8x8x32xf32, #tpu.memory_space<vmem>>, vector<1x8x32xf32>,
    %c8_i32 = arith.constant 8 : i32
    %c0_80 = arith.constant 0 : index
    %c0_81 = arith.constant 0 : index
    %c0_82 = arith.constant 0 : index
    %391 = vector.load %arg9[%c0_80, %c0_81, %c0_82] : memref<2x8x32xf32, #tpu.memory_space<vmem>>, vector<1x8x32xf32>
    %392 = vector.shape_cast %391 : vector<1x8x32xf32> to vector<8x32xf32>
    %393 = vector.shape_cast %366 : vector<8x32xf32> to vector<1x8x32xf32>
    tpu.vector_store %arg9[%c0_80, %c0_81, %c0_82], %393 {strides = array<i32>} : memref<2x8x32xf32, #tpu.memory_space<vmem>>, vector<1x8x32xf32>,
    %c1 = arith.constant 1 : index
    %c0_83 = arith.constant 0 : index
    %c0_84 = arith.constant 0 : index
    %394 = vector.load %arg9[%c1, %c0_83, %c0_84] : memref<2x8x32xf32, #tpu.memory_space<vmem>>, vector<1x8x32xf32>
    %395 = vector.shape_cast %394 : vector<1x8x32xf32> to vector<8x32xf32>
    %396 = vector.shape_cast %386 : vector<8x32xf32> to vector<1x8x32xf32>
    tpu.vector_store %arg9[%c1, %c0_83, %c0_84], %396 {strides = array<i32>} : memref<2x8x32xf32, #tpu.memory_space<vmem>>, vector<1x8x32xf32>,
    %c0_85 = arith.constant 0 : index
    %c0_86 = arith.constant 0 : index
    %c0_87 = arith.constant 0 : index
    %397 = vector.load %arg10[%c0_85, %c0_86, %c0_87] : memref<2x8x32xf32, #tpu.memory_space<vmem>>, vector<1x8x32xf32>
    %398 = vector.shape_cast %397 : vector<1x8x32xf32> to vector<8x32xf32>
    %399 = vector.shape_cast %364 : vector<8x32xf32> to vector<1x8x32xf32>
    tpu.vector_store %arg10[%c0_85, %c0_86, %c0_87], %399 {strides = array<i32>} : memref<2x8x32xf32, #tpu.memory_space<vmem>>, vector<1x8x32xf32>,
    %c1_88 = arith.constant 1 : index
    %c0_89 = arith.constant 0 : index
    %c0_90 = arith.constant 0 : index
    %400 = vector.load %arg10[%c1_88, %c0_89, %c0_90] : memref<2x8x32xf32, #tpu.memory_space<vmem>>, vector<1x8x32xf32>
    %401 = vector.shape_cast %400 : vector<1x8x32xf32> to vector<8x32xf32>
    %402 = vector.shape_cast %384 : vector<8x32xf32> to vector<1x8x32xf32>
    tpu.vector_store %arg10[%c1_88, %c0_89, %c0_90], %402 {strides = array<i32>} : memref<2x8x32xf32, #tpu.memory_space<vmem>>, vector<1x8x32xf32>,
    %c0_91 = arith.constant 0 : index
    %c0_92 = arith.constant 0 : index
    %c0_93 = arith.constant 0 : index
    %403 = vector.load %arg12[%c0_91, %c0_92, %c0_93] : memref<8x8x32xf32, #tpu.memory_space<vmem>>, vector<8x8x32xf32>
    %404 = vector.shape_cast %403 : vector<8x8x32xf32> to vector<64x32xf32>
    %405 = arith.truncf %404 : vector<64x32xf32> to vector<64x32xbf16>
    %c0_94 = arith.constant 0 : index
    %c0_95 = arith.constant 0 : index
    %406 = vector.load %arg6[%c0_94, %c0_95] : memref<32x128xbf16, #tpu.memory_space<vmem>>, vector<32x128xbf16>
    %cst_96 = arith.constant dense<0.000000e+00> : vector<64x128xf32>
    %407 = tpu.matmul %405, %406, %cst_96 {dimension_numbers = #tpu.dot_dimension_numbers<[1], [0], [0], [1], [0, 0, 1, 1], [], []>} : vector<64x32xbf16>, vector<32x128xbf16>, vector<64x128xf32> -> vector<64x128xf32>
    %c0_97 = arith.constant 0 : index
    %c0_98 = arith.constant 0 : index
    %408 = vector.load %arg7[%c0_97, %c0_98] : memref<1x128xf32, #tpu.memory_space<vmem>>, vector<1x128xf32>
    %409 = vector.broadcast %408 : vector<1x128xf32> to vector<64x128xf32>
    %410 = arith.addf %407, %409 : vector<64x128xf32>
    %411 = vector.shape_cast %410 : vector<64x128xf32> to vector<8x8x128xf32>
    %c0_99 = arith.constant 0 : index
    %c0_100 = arith.constant 0 : index
    %c0_101 = arith.constant 0 : index
    %412 = vector.load %arg8[%c0_99, %c0_100, %c0_101] : memref<8x8x128xf32, #tpu.memory_space<vmem>>, vector<8x8x128xf32>
    tpu.vector_store %arg8[%c0_99, %c0_100, %c0_101], %411 {strides = array<i32>} : memref<8x8x128xf32, #tpu.memory_space<vmem>>, vector<8x8x128xf32>,
    return
  }
}

</mosaic_0001>

<bundles_post_ra>
// kernel: pos_tagging_rnn_forward.1
= control target key start
LH: loop header
LB: loop body
LE: loop exit
PB: predicated region body
PF: predicated region fallthrough
CT: control target
= control target key end

     0   :  { %v1799_v10 = vmov 0   ;;  %s1800_s16 = smov 32   ;;  %s1801_s17 = smov 64   ;;  %vm309_vm4 = vcmask 261120   ;;  %vm394_vm5 = vcmask 523264   ;;  %s2319_s1 = inlined_call_operand.vmem [shape: bf16[256,128], index: 1, kind: input, shape index: {}]   ;;  %s2320_s2 = inlined_call_operand.vmem [shape: bf16[32,128], index: 2, kind: input, shape index: {}]   ;;  %s2321_s0 = inlined_call_operand.vmem [shape: bf16[8,8,256], index: 0, kind: input, shape index: {}]   ;;  %s2322_s3 = inlined_call_operand.vmem [shape: f32[1,128], index: 3, kind: input, shape index: {}]   ;;  %s2323_s4 = inlined_call_operand.vmem [shape: bf16[64,128], index: 4, kind: input, shape index: {}]   ;;  %s2324_s5 = inlined_call_operand.vmem [shape: f32[1,128], index: 5, kind: input, shape index: {}]   ;;  %s2325_s9 = inlined_call_operand.vmem [shape: f32[2,8,32], index: 9, kind: output, shape index: {1}]   ;;  %s2326_s6 = inlined_call_operand.vmem [shape: bf16[32,128], index: 6, kind: input, shape index: {}]   ;;  %s2327_s7 = inlined_call_operand.vmem [shape: f32[1,128], index: 7, kind: input, shape index: {}]   ;;  %s2328_s10 = inlined_call_operand.vmem [shape: f32[2,8,32], index: 10, kind: output, shape index: {2}]   ;;  %s2329_s8 = inlined_call_operand.vmem [shape: f32[8,8,128], index: 8, kind: output, shape index: {0}]  }
   0x1   :  { %v1643_v0 = vld [vmem:[%s2319_s1 + $0x38] sm:$0xff]  ;;  %v1642_v2 = vld [vmem:[%s2319_s1 + $0x30] sm:$0xff]  ;;  %v1873_v4 = vld [vmem:[%s2320_s2 + $0x8] sm:$0xff]  ;;  %s1802_s27 = smov 96  }
   0x2   :  { %v1651_v1 = vld [vmem:[%s2319_s1 + $0x78] sm:$0xff]  ;;  %209 = vmatpush.bf16.msra.mxu0 %v1643_v0  ;;  %v1650_v3 = vld [vmem:[%s2319_s1 + $0x70] sm:$0xff]  ;;  %319 = vmatpush.bf16.msra.mxu2 %v1873_v4  ;;  %v1879_v5 = vld [vmem:[%s2320_s2] sm:$0xff] }
   0x3   :  { %238 = vmatpush.bf16.msra.mxu1 %v1651_v1  ;;  %v1641_v6 = vld [vmem:[%s2319_s1 + $0x28] sm:$0xff]  ;;  %v1640_v8 = vld [vmem:[%s2319_s1 + $0x20] sm:$0xff]  ;;  %v1639_v11 = vld [vmem:[%s2319_s1 + $0x18] sm:$0xff] }
   0x4   :  { %v1649_v7 = vld [vmem:[%s2319_s1 + $0x68] sm:$0xff]  ;;  %v1648_v9 = vld [vmem:[%s2319_s1 + $0x60] sm:$0xff]  ;;  %v1647_v12 = vld [vmem:[%s2319_s1 + $0x58] sm:$0xff] }
   0x5   :  { %v1638_v13 = vld [vmem:[%s2319_s1 + $0x10] sm:$0xff]  ;;  %v1637_v15 = vld [vmem:[%s2319_s1 + $0x8] sm:$0xff]  ;;  %v1636_v17 = vld [vmem:[%s2319_s1] sm:$0xff] }
   0x6   :  { %210 = vmatpush.bf16.msra.mxu0 %v1642_v2  ;;  %320 = vmatpush.bf16.msra.mxu2 %v1879_v5  ;;  %v1646_v14 = vld [vmem:[%s2319_s1 + $0x50] sm:$0xff]  ;;  %v1645_v16 = vld [vmem:[%s2319_s1 + $0x48] sm:$0xff]  ;;  %v1644_v18 = vld [vmem:[%s2319_s1 + $0x40] sm:$0xff] }
   0x7   :  { %239 = vmatpush.bf16.msra.mxu1 %v1650_v3  ;;  %v1465_v19 = vld [vmem:[%s2321_s0] sm:$0xf]  ;;  %v1629_v20 = vld [vmem:[%s2321_s0 + $0x4] sm:$0xf0]  ;;  %v1628_v21 = vld [vmem:[%s2321_s0 + $0x4] sm:$0xf] }
   0x8   :  { %v1467_v22 = vld [vmem:[%s2321_s0 + $0x8] sm:$0xf0]  ;;  %v1466_v23 = vor.u32 %v1629_v20, %v1465_v19  ;;  %v1937_v27 = vld [vmem:[%s2322_s3] ss:$0 sm:$0xff]  ;;  %v1951_v56 = vld [vmem:[%s2323_s4 + $0x18] sm:$0xff] }
   0x9   :  { %321 = vmatmul.bf16.vlgmr.msra.gmra.mxu2 %v1799_v10  ;;  %v1470_v24 = vor.u32 %v1628_v21, %v1467_v22  ;;  %402 = vmatpush.bf16.msra.mxu3 %v1951_v56  ;;  %v1957_v57 = vld [vmem:[%s2323_s4 + $0x10] sm:$0xff]  ;;  %v1964_v58 = vld [vmem:[%s2323_s4 + $0x8] sm:$0xff]  ;;  %v1972_v59 = vld [vmem:[%s2323_s4] sm:$0xff] }
   0xa   :  { %469 = vmatpush.bf16.msrb.mxu2 %v1873_v4  ;;  %211 = vmatpush.bf16.msra.mxu0 %v1641_v6  ;;  %v1998_v10 = vld [vmem:[%s2324_s5] ss:$0 sm:$0xff] }
   0xb   :  { %240 = vmatpush.bf16.msra.mxu1 %v1649_v7 }
   0xd   :  { %403 = vmatpush.bf16.msra.mxu3 %v1957_v57 }
   0xe   :  { %470 = vmatpush.bf16.msrb.mxu2 %v1879_v5  ;;  %212 = vmatpush.bf16.msra.mxu0 %v1640_v8 }
   0xf   :  { %241 = vmatpush.bf16.msra.mxu1 %v1648_v9 }
  0x11   :  { %404 = vmatpush.bf16.msra.mxu3 %v1964_v58 }
  0x12   :  { %598 = vmatpush.bf16.msra.mxu2 %v1873_v4  ;;  %213 = vmatpush.bf16.msra.mxu0 %v1639_v11 }
  0x13   :  { %242 = vmatpush.bf16.msra.mxu1 %v1647_v12 }
  0x15   :  { %405 = vmatpush.bf16.msra.mxu3 %v1972_v59 }
  0x16   :  { %599 = vmatpush.bf16.msra.mxu2 %v1879_v5  ;;  %214 = vmatpush.bf16.msra.mxu0 %v1638_v13 }
  0x17   :  { %243 = vmatpush.bf16.msra.mxu1 %v1646_v14 }
  0x19   :  { %530 = vmatpush.bf16.msrb.mxu3 %v1951_v56 }
  0x1a   :  { %215 = vmatpush.bf16.msra.mxu0 %v1637_v15 }
  0x1b   :  { %244 = vmatpush.bf16.msra.mxu1 %v1645_v16 }
  0x1d   :  { %531 = vmatpush.bf16.msrb.mxu3 %v1957_v57 }
  0x1e   :  { %216 = vmatpush.bf16.msra.mxu0 %v1636_v17 }
  0x1f   :  { %245 = vmatpush.bf16.msra.mxu1 %v1644_v18 }
  0x21   :  { %217 = vmatmul.bf16.vlgmr.msra.gmra.mxu0 %v1466_v23  ;;  %532 = vmatpush.bf16.msrb.mxu3 %v1964_v58 }
  0x22   :  { %246 = vmatmul.bf16.vlgmr.msra.gmra.mxu1 %v1470_v24  ;;  %1046 = vmatpush.bf16.msrb.mxu0 %v1951_v56 }
  0x25   :  { %533 = vmatpush.bf16.msrb.mxu3 %v1972_v59 }
  0x26   :  { %1047 = vmatpush.bf16.msrb.mxu0 %v1957_v57 }
  0x2a   :  { %1048 = vmatpush.bf16.msrb.mxu0 %v1964_v58 }
  0x2e   :  { %1049 = vmatpush.bf16.msrb.mxu0 %v1972_v59 }
  0x32   :  { %1304 = vmatpush.bf16.msra.mxu0 %v1951_v56 }
  0x36   :  { %1305 = vmatpush.bf16.msra.mxu0 %v1957_v57 }
  0x3a   :  { %1306 = vmatpush.bf16.msra.mxu0 %v1964_v58 }
  0x3e   :  { %1307 = vmatpush.bf16.msra.mxu0 %v1972_v59 }
  0x8c   :  { %v322_v25 = vpop.f32.mrf.mxu2 }
  0x94   :  { %v324_v26 = vpop.f32.mrf.mxu2 }
  0x9e   :  { %v218_v28 = vpop.f32.mrf.mxu0 }
  0x9f   :  { %v247_v29 = vpop.f32.mrf.mxu1 }
  0xa0   :  { %v248_v30 = vadd.f32 %v247_v29, %v218_v28 }
  0xa2   :  { %v296_v31 = vadd.f32 %v1937_v27, %v248_v30 }
  0xa4   :  { %v326_v32 = vadd.f32 %v322_v25, %v296_v31 }
  0xa6   :  { %1669 = vtanh.f32 %v326_v32  ;;  %v1567_v34 = vmul.f32 -1.442695, %v326_v32  ;;  %v220_v0 = vpop.f32.mrf.mxu0 }
  0xa7   :  { %v249_v1 = vpop.f32.mrf.mxu1 }
  0xa8   :  { %1671 = vpow2.f32 %v1567_v34  ;;  %v250_v2 = vadd.f32 %v249_v1, %v220_v0  ;;  %v1631_v0 = vld [vmem:[%s2321_s0 + $0x14] sm:$0xf0]  ;;  %v1630_v1 = vld [vmem:[%s2321_s0 + $0x14] sm:$0xf] }
  0xaa   :  { %v455_v3 = vadd.f32 %v1937_v27, %v250_v2 }
  0xac   :  { %v1670_v33 = vpop.eup %1669 }
  0xad   :  { %349 = vrot.lane.b32.xlu0 %v1670_v33, %s1800_s16 }
  0xae   :  { %v1672_v35 = vpop.eup %1671 }
  0xaf   :  { %v330_v36 = vadd.f32 1.0, %v1672_v35 }
  0xb1   :  { %1673 = vrcp.f32 %v330_v36  ;;  %v342_v42 = vand.u32 2147483648, %v330_v36  ;;  %vm336_vm1 = vweird.f32 %v330_v36  ;;  %v340_v43 = vand.u32 2147483647, %v330_v36 }
  0xb3   :  { %v343_v45 = vor.u32 1.1754944e-38, %v342_v42  ;;  %vm341_vm3 = vcmp.eq.f32.partialorder %v340_v43, 8.507059e+37 }
  0xb7   :  { %v1674_v37 = vpop.eup %1673 }
  0xb8   :  { %v332_v38 = vmul.f32 %v1674_v37, %v330_v36  ;;  %vm337_vm0 = vweird.f32 %v1674_v37 }
  0xb9   :  { %vm338_vm2 = vmor %vm336_vm1, %vm337_vm0 }
  0xba   :  { %v333_v39 = vsub.f32 1.0, %v332_v38 }
  0xbc   :  { %v334_v40 = vmul.f32 %v1674_v37, %v333_v39 }
  0xbe   :  { %v335_v41 = vadd.f32 %v1674_v37, %v334_v40 }
  0xc0   :  { %v339_v44 = vsel %vm338_vm2, %v1674_v37, %v335_v41 }
  0xc1   :  { %v344_v47 = vsel %vm341_vm3, %v343_v45, %v339_v44 }
  0xc2   :  { %v347_v49 = vmul.f32 0.0, %v344_v47 }
 0x11f   :  { %v350_v46 = vpop.permute.xlu0 %349 }
 0x120   :  { %v352_v48 = vmul.f32 %v350_v46, %v344_v47 }
 0x122   :  { %354 = vrot.lane.b32.xlu0 %v352_v48, %s1800_s16 }
 0x194   :  { %v355_v50 = vpop.permute.xlu0 %354 }
 0x195   :  { %v1942_v51 = vadd.f32 %v355_v50, %v347_v49 }
 0x197   :  { %1675 = vtanh.f32 %v1942_v51 }
 0x19d   :  { %v1676_v52 = vpop.eup %1675 }
 0x19e   :  { %360 = vrot.lane.b32.xlu1 %v1676_v52, %s1800_s16 }
 0x210   :  { %v361_v53 = vpop.permute.xlu1 %360 }
 0x211   :  { %v363_v54 = vmul.f32 %v361_v53, %v344_v47 }
 0x213   :  { %365 = vrot.lane.b32.xlu1 %v363_v54, %s1801_s17  ;;  %v456_v55 = vpack.c.bf16 %v363_v54, %v363_v54 }
 0x215   :  { %458 = vrot.lane.b32.xlu2 %v456_v55, %s1801_s17 }
 0x26f   :  { %v459_v60 = vpop.permute.xlu2 %458 }
 0x270   :  { %1586 = vmatmul.msk.bf16.vlgmr.msrb.gmra.mxu2 %vm309_vm4, %v459_v60 }
 0x271   :  { %727 = vmatpush.bf16.msrb.mxu2 %v1873_v4 }
 0x275   :  { %728 = vmatpush.bf16.msrb.mxu2 %v1879_v5 }
 0x285   :  { %v366_v61 = vpop.permute.xlu1 %365 }
 0x286   :  { %v368_v62 = vsel %vm309_vm4, %v366_v61, 0.0 }
 0x287   :  { %v369_v63 = vpack.c.bf16 %v368_v62, %v368_v62 }
 0x289   :  { %1584 = vmatmul.msk.bf16.vlgmr.msra.gmra.mxu3 %vm394_vm5, %v369_v63  ;;  %v1473_v63 = vld [vmem:[%s2321_s0 + $0x10] sm:$0xf] }
 0x28a   :  { %659 = vmatpush.bf16.msra.mxu3 %v1951_v56  ;;  %v1474_v2 = vor.u32 %v1631_v0, %v1473_v63 }
 0x28c   :  { %222 = vmatmul.bf16.gmra.mxu0 %v1474_v2 }
 0x28e   :  { %660 = vmatpush.bf16.msra.mxu3 %v1957_v57 }
 0x292   :  { %661 = vmatpush.bf16.msra.mxu3 %v1964_v58 }
 0x296   :  { %662 = vmatpush.bf16.msra.mxu3 %v1972_v59 }
 0x2f3   :  { %v472_v6 = vpop.f32.mrf.mxu2 }
 0x2f4   :  { %v476_v7 = vadd.f32 %v472_v6, %v455_v3  ;;  %v1475_v3 = vld [vmem:[%s2321_s0 + $0x18] sm:$0xf0] }
 0x2f5   :  { %v1478_v6 = vor.u32 %v1630_v1, %v1475_v3 }
 0x2f6   :  { %1677 = vtanh.f32 %v476_v7  ;;  %v1587_v15 = vmul.f32 -1.442695, %v476_v7 }
 0x2f7   :  { %251 = vmatmul.bf16.gmra.mxu1 %v1478_v6 }
 0x2fb   :  { %v474_v8 = vpop.f32.mrf.mxu2 }
 0x2fc   :  { %v1678_v9 = vpop.eup %1677 }
 0x2fd   :  { %499 = vrot.lane.b32.xlu2 %v1678_v9, %s1800_s16 }
 0x30c   :  { %v407_v11 = vpop.f32.mrf.mxu3 }
 0x30d   :  { %v408_v12 = vadd.f32 %v1998_v10, %v407_v11 }
 0x30f   :  { %1679 = vtanh.f32 %v408_v12  ;;  %v1585_v31 = vmul.f32 -1.442695, %v408_v12 }
 0x310   :  { %1681 = vpow2.f32 %v1587_v15 }
 0x314   :  { %v409_v13 = vpop.f32.mrf.mxu3 }
 0x315   :  { %v1680_v14 = vpop.eup %1679  ;;  %v223_v13 = vpop.f32.mrf.mxu0 }
 0x316   :  { %433 = vrot.lane.b32.xlu0 %v1680_v14, %s1800_s16  ;;  %v1682_v16 = vpop.eup %1681 }
 0x317   :  { %v480_v17 = vadd.f32 1.0, %v1682_v16 }
 0x319   :  { %1683 = vrcp.f32 %v480_v17  ;;  %v492_v23 = vand.u32 2147483648, %v480_v17  ;;  %vm486_vm7 = vweird.f32 %v480_v17  ;;  %v490_v24 = vand.u32 2147483647, %v480_v17 }
 0x31a   :  { %1685 = vpow2.f32 %v1585_v31 }
 0x31b   :  { %v493_v26 = vor.u32 1.1754944e-38, %v492_v23  ;;  %vm491_vm9 = vcmp.eq.f32.partialorder %v490_v24, 8.507059e+37 }
 0x31f   :  { %v1684_v18 = vpop.eup %1683 }
 0x320   :  { %v482_v19 = vmul.f32 %v1684_v18, %v480_v17  ;;  %vm487_vm6 = vweird.f32 %v1684_v18  ;;  %v1686_v32 = vpop.eup %1685 }
 0x321   :  { %vm488_vm8 = vmor %vm486_vm7, %vm487_vm6  ;;  %v414_v33 = vadd.f32 1.0, %v1686_v32 }
 0x322   :  { %v483_v20 = vsub.f32 1.0, %v482_v19 }
 0x323   :  { %1687 = vrcp.f32 %v414_v33  ;;  %v426_v39 = vand.u32 2147483648, %v414_v33  ;;  %vm420_vm11 = vweird.f32 %v414_v33  ;;  %v424_v40 = vand.u32 2147483647, %v414_v33 }
 0x324   :  { %v484_v21 = vmul.f32 %v1684_v18, %v483_v20 }
 0x325   :  { %v427_v42 = vor.u32 1.1754944e-38, %v426_v39  ;;  %vm425_vm13 = vcmp.eq.f32.partialorder %v424_v40, 8.507059e+37 }
 0x326   :  { %v485_v22 = vadd.f32 %v1684_v18, %v484_v21 }
 0x328   :  { %v489_v25 = vsel %vm488_vm8, %v1684_v18, %v485_v22 }
 0x329   :  { %v494_v29 = vsel %vm491_vm9, %v493_v26, %v489_v25  ;;  %v1688_v34 = vpop.eup %1687 }
 0x32a   :  { %v416_v35 = vmul.f32 %v1688_v34, %v414_v33  ;;  %vm421_vm10 = vweird.f32 %v1688_v34  ;;  %v497_v46 = vmul.f32 %v494_v29, %v1942_v51 }
 0x32b   :  { %vm422_vm12 = vmor %vm420_vm11, %vm421_vm10 }
 0x32c   :  { %v417_v36 = vsub.f32 1.0, %v416_v35 }
 0x32e   :  { %v418_v37 = vmul.f32 %v1688_v34, %v417_v36 }
 0x330   :  { %v419_v38 = vadd.f32 %v1688_v34, %v418_v37 }
 0x332   :  { %v423_v41 = vsel %vm422_vm12, %v1688_v34, %v419_v38 }
 0x333   :  { %v428_v44 = vsel %vm425_vm13, %v427_v42, %v423_v41 }
 0x334   :  { %v431_v50 = vmul.f32 0.0, %v428_v44 }
 0x357   :  { %v500_v28 = vpop.permute.xlu2 %499 }
 0x358   :  { %v502_v30 = vmul.f32 %v500_v28, %v494_v29 }
 0x35a   :  { %504 = vrot.lane.b32.xlu1 %v502_v30, %s1800_s16 }
 0x374   :  { %v252_v14 = vpop.f32.mrf.mxu1 }
 0x375   :  { %v253_v15 = vadd.f32 %v252_v14, %v223_v13 }
 0x377   :  { %v584_v16 = vadd.f32 %v1937_v27, %v253_v15 }
 0x388   :  { %v434_v43 = vpop.permute.xlu0 %433 }
 0x389   :  { %v436_v45 = vmul.f32 %v434_v43, %v428_v44 }
 0x38b   :  { %438 = vrot.lane.b32.xlu2 %v436_v45, %s1800_s16 }
 0x3cc   :  { %v505_v47 = vpop.permute.xlu1 %504 }
 0x3cd   :  { %v2005_v48 = vadd.f32 %v505_v47, %v497_v46 }
 0x3cf   :  { %1689 = vtanh.f32 %v2005_v48 }
 0x3d5   :  { %v1690_v49 = vpop.eup %1689 }
 0x3d6   :  { %510 = vrot.lane.b32.xlu0 %v1690_v49, %s1800_s16 }
 0x3e5   :  { %v439_v52 = vpop.permute.xlu2 %438 }
 0x3e6   :  { %v2009_v53 = vadd.f32 %v439_v52, %v431_v50 }
 0x3e8   :  { %1691 = vtanh.f32 %v2009_v53 }
 0x3ee   :  { %v1692_v54 = vpop.eup %1691 }
 0x3ef   :  { %444 = vrot.lane.b32.xlu1 %v1692_v54, %s1800_s16 }
 0x448   :  { %v511_v55 = vpop.permute.xlu0 %510 }
 0x449   :  { %v513_v60 = vmul.f32 %v511_v55, %v494_v29 }
 0x44b   :  { %v585_v51 = vpack.c.bf16 %v513_v60, %v513_v60  ;;  %515 = vrot.lane.b32.xlu2 %v513_v60, %s1801_s17 }
 0x44d   :  { %587 = vrot.lane.b32.xlu1 %v585_v51, %s1801_s17 }
 0x461   :  { %v445_v61 = vpop.permute.xlu1 %444 }
 0x462   :  { %v2015_v62 = vmul.f32 %v445_v61, %v428_v44 }
 0x464   :  { %518 = vrot.lane.b32.xlu0 %v2015_v62, %s1802_s27 }
 0x4a5   :  { %v516_v8 = vpop.permute.xlu2 %515 }
 0x4bf   :  { %v588_v7 = vpop.permute.xlu1 %587 }
 0x4c0   :  { %1590 = vmatmul.msk.bf16.vlgmr.msra.gmra.mxu2 %vm309_vm4, %v588_v7 }
 0x4c1   :  { %856 = vmatpush.bf16.msra.mxu2 %v1873_v4 }
 0x4c5   :  { %857 = vmatpush.bf16.msra.mxu2 %v1879_v5 }
 0x4d6   :  { %v519_v9 = vpop.permute.xlu0 %518 }
 0x4d7   :  { %v521_v11 = vsel %vm309_vm4, %v516_v8, %v519_v9 }
 0x4d8   :  { %v522_v12 = vpack.c.bf16 %v521_v11, %v521_v11 }
 0x4da   :  { %1588 = vmatmul.msk.bf16.vlgmr.msrb.gmra.mxu3 %vm394_vm5, %v522_v12 }
 0x4db   :  { %788 = vmatpush.bf16.msrb.mxu3 %v1951_v56 }
 0x4df   :  { %789 = vmatpush.bf16.msrb.mxu3 %v1957_v57 }
 0x4e3   :  { %790 = vmatpush.bf16.msrb.mxu3 %v1964_v58 }
 0x4e7   :  { %791 = vmatpush.bf16.msrb.mxu3 %v1972_v59 }
 0x543   :  { %v601_v17 = vpop.f32.mrf.mxu2 }
 0x544   :  { %v605_v18 = vadd.f32 %v601_v17, %v584_v16 }
 0x546   :  { %1693 = vtanh.f32 %v605_v18  ;;  %v1591_v25 = vmul.f32 -1.442695, %v605_v18  ;;  %v225_v18 = vpop.f32.mrf.mxu0 }
 0x54b   :  { %v603_v19 = vpop.f32.mrf.mxu2 }
 0x54c   :  { %v1694_v20 = vpop.eup %1693  ;;  %v254_v19 = vpop.f32.mrf.mxu1 }
 0x54d   :  { %628 = vrot.lane.b32.xlu2 %v1694_v20, %s1800_s16  ;;  %v255_v20 = vadd.f32 %v254_v19, %v225_v18 }
 0x55d   :  { %v535_v21 = vpop.f32.mrf.mxu3 }
 0x55e   :  { %v536_v22 = vadd.f32 %v1998_v10, %v535_v21  ;;  %v713_v21 = vadd.f32 %v1937_v27, %v255_v20  ;;  %v1633_v20 = vld [vmem:[%s2321_s0 + $0x24] sm:$0xf0] }
 0x560   :  { %1695 = vtanh.f32 %v536_v22  ;;  %v1589_v41 = vmul.f32 -1.442695, %v536_v22 }
 0x561   :  { %1697 = vpow2.f32 %v1591_v25 }
 0x565   :  { %v537_v23 = vpop.f32.mrf.mxu3 }
 0x566   :  { %v1696_v24 = vpop.eup %1695 }
 0x567   :  { %561 = vrot.lane.b32.xlu0 %v1696_v24, %s1800_s16  ;;  %v1698_v26 = vpop.eup %1697 }
 0x568   :  { %v609_v28 = vadd.f32 1.0, %v1698_v26 }
 0x56a   :  { %1699 = vrcp.f32 %v609_v28  ;;  %v621_v34 = vand.u32 2147483648, %v609_v28  ;;  %vm615_vm15 = vweird.f32 %v609_v28  ;;  %v619_v35 = vand.u32 2147483647, %v609_v28 }
 0x56b   :  { %1701 = vpow2.f32 %v1589_v41 }
 0x56c   :  { %v622_v37 = vor.u32 1.1754944e-38, %v621_v34  ;;  %vm620_vm1 = vcmp.eq.f32.partialorder %v619_v35, 8.507059e+37 }
 0x570   :  { %v1700_v29 = vpop.eup %1699 }
 0x571   :  { %v611_v30 = vmul.f32 %v1700_v29, %v609_v28  ;;  %vm616_vm14 = vweird.f32 %v1700_v29  ;;  %v1702_v42 = vpop.eup %1701 }
 0x572   :  { %vm617_vm0 = vmor %vm615_vm15, %vm616_vm14  ;;  %v542_v43 = vadd.f32 1.0, %v1702_v42 }
 0x573   :  { %v612_v31 = vsub.f32 1.0, %v611_v30 }
 0x574   :  { %1703 = vrcp.f32 %v542_v43  ;;  %v554_v50 = vand.u32 2147483648, %v542_v43  ;;  %vm548_vm3 = vweird.f32 %v542_v43  ;;  %v552_v52 = vand.u32 2147483647, %v542_v43 }
 0x575   :  { %v613_v32 = vmul.f32 %v1700_v29, %v612_v31 }
 0x576   :  { %v555_v55 = vor.u32 1.1754944e-38, %v554_v50  ;;  %vm553_vm7 = vcmp.eq.f32.partialorder %v552_v52, 8.507059e+37 }
 0x577   :  { %v614_v33 = vadd.f32 %v1700_v29, %v613_v32 }
 0x579   :  { %v618_v36 = vsel %vm617_vm0, %v1700_v29, %v614_v33 }
 0x57a   :  { %v623_v39 = vsel %vm620_vm1, %v622_v37, %v618_v36  ;;  %v1704_v44 = vpop.eup %1703 }
 0x57b   :  { %v544_v45 = vmul.f32 %v1704_v44, %v542_v43  ;;  %vm549_vm2 = vweird.f32 %v1704_v44  ;;  %v626_v63 = vmul.f32 %v623_v39, %v2005_v48 }
 0x57c   :  { %vm550_vm6 = vmor %vm548_vm3, %vm549_vm2 }
 0x57d   :  { %v545_v46 = vsub.f32 1.0, %v544_v45 }
 0x57f   :  { %v546_v47 = vmul.f32 %v1704_v44, %v545_v46 }
 0x581   :  { %v547_v49 = vadd.f32 %v1704_v44, %v546_v47 }
 0x583   :  { %v551_v54 = vsel %vm550_vm6, %v1704_v44, %v547_v49 }
 0x584   :  { %v556_v51 = vsel %vm553_vm7, %v555_v55, %v551_v54 }
 0x585   :  { %v559_v3 = vmul.f32 %v556_v51, %v2009_v53 }
 0x5a7   :  { %v629_v38 = vpop.permute.xlu2 %628 }
 0x5a8   :  { %v631_v40 = vmul.f32 %v629_v38, %v623_v39 }
 0x5aa   :  { %633 = vrot.lane.b32.xlu1 %v631_v40, %s1800_s16 }
 0x5d9   :  { %v562_v60 = vpop.permute.xlu0 %561 }
 0x5da   :  { %v564_v61 = vmul.f32 %v562_v60, %v556_v51 }
 0x5dc   :  { %566 = vrot.lane.b32.xlu2 %v564_v61, %s1800_s16 }
 0x61c   :  { %v634_v0 = vpop.permute.xlu1 %633 }
 0x61d   :  { %v2047_v1 = vadd.f32 %v634_v0, %v626_v63 }
 0x61f   :  { %1705 = vtanh.f32 %v2047_v1 }
 0x625   :  { %v1706_v2 = vpop.eup %1705 }
 0x626   :  { %639 = vrot.lane.b32.xlu0 %v1706_v2, %s1800_s16 }
 0x636   :  { %v567_v6 = vpop.permute.xlu2 %566 }
 0x637   :  { %v2052_v7 = vadd.f32 %v567_v6, %v559_v3 }
 0x639   :  { %1707 = vtanh.f32 %v2052_v7 }
 0x63f   :  { %v1708_v8 = vpop.eup %1707 }
 0x640   :  { %572 = vrot.lane.b32.xlu1 %v1708_v8, %s1800_s16 }
 0x698   :  { %v640_v9 = vpop.permute.xlu0 %639 }
 0x699   :  { %v642_v48 = vmul.f32 %v640_v9, %v623_v39 }
 0x69b   :  { %v714_v11 = vpack.c.bf16 %v642_v48, %v642_v48  ;;  %644 = vrot.lane.b32.xlu2 %v642_v48, %s1801_s17 }
 0x69d   :  { %716 = vrot.lane.b32.xlu1 %v714_v11, %s1801_s17 }
 0x6b2   :  { %v573_v12 = vpop.permute.xlu1 %572 }
 0x6b3   :  { %v2058_v13 = vmul.f32 %v573_v12, %v556_v51 }
 0x6b5   :  { %647 = vrot.lane.b32.xlu0 %v2058_v13, %s1802_s27 }
 0x6f5   :  { %v645_v14 = vpop.permute.xlu2 %644 }
 0x70f   :  { %v717_v53 = vpop.permute.xlu1 %716 }
 0x710   :  { %1594 = vmatmul.msk.bf16.vlgmr.msrb.gmra.mxu2 %vm309_vm4, %v717_v53 }
 0x711   :  { %985 = vmatpush.bf16.msrb.mxu2 %v1873_v4 }
 0x715   :  { %986 = vmatpush.bf16.msrb.mxu2 %v1879_v5 }
 0x727   :  { %v648_v15 = vpop.permute.xlu0 %647 }
 0x728   :  { %v650_v16 = vsel %vm309_vm4, %v645_v14, %v648_v15 }
 0x729   :  { %v651_v17 = vpack.c.bf16 %v650_v16, %v650_v16 }
 0x72b   :  { %1592 = vmatmul.msk.bf16.vlgmr.msra.gmra.mxu3 %vm394_vm5, %v651_v17 }
 0x72c   :  { %917 = vmatpush.bf16.msra.mxu3 %v1951_v56 }
 0x730   :  { %918 = vmatpush.bf16.msra.mxu3 %v1957_v57 }
 0x734   :  { %919 = vmatpush.bf16.msra.mxu3 %v1964_v58 }
 0x738   :  { %920 = vmatpush.bf16.msra.mxu3 %v1972_v59 }
 0x793   :  { %v730_v22 = vpop.f32.mrf.mxu2 }
 0x794   :  { %v734_v23 = vadd.f32 %v730_v22, %v713_v21  ;;  %v1632_v21 = vld [vmem:[%s2321_s0 + $0x24] sm:$0xf] }
 0x796   :  { %1709 = vtanh.f32 %v734_v23  ;;  %v1595_v31 = vmul.f32 -1.442695, %v734_v23  ;;  %v1483_v23 = vld [vmem:[%s2321_s0 + $0x28] sm:$0xf0] }
 0x79b   :  { %v732_v24 = vpop.f32.mrf.mxu2 }
 0x79c   :  { %v1710_v25 = vpop.eup %1709  ;;  %v1486_v24 = vor.u32 %v1632_v21, %v1483_v23 }
 0x79d   :  { %757 = vrot.lane.b32.xlu2 %v1710_v25, %s1800_s16 }
 0x79e   :  { %256 = vmatmul.bf16.gmra.mxu1 %v1486_v24 }
 0x7ae   :  { %v664_v26 = vpop.f32.mrf.mxu3 }
 0x7af   :  { %v665_v28 = vadd.f32 %v1998_v10, %v664_v26 }
 0x7b1   :  { %1711 = vtanh.f32 %v665_v28  ;;  %v1593_v46 = vmul.f32 -1.442695, %v665_v28 }
 0x7b2   :  { %1713 = vpow2.f32 %v1595_v31 }
 0x7b6   :  { %v666_v29 = vpop.f32.mrf.mxu3 }
 0x7b7   :  { %v1712_v30 = vpop.eup %1711 }
 0x7b8   :  { %690 = vrot.lane.b32.xlu0 %v1712_v30, %s1800_s16  ;;  %v1714_v32 = vpop.eup %1713 }
 0x7b9   :  { %v738_v33 = vadd.f32 1.0, %v1714_v32 }
 0x7bb   :  { %1715 = vrcp.f32 %v738_v33  ;;  %v750_v39 = vand.u32 2147483648, %v738_v33  ;;  %vm744_vm9 = vweird.f32 %v738_v33  ;;  %v748_v40 = vand.u32 2147483647, %v738_v33 }
 0x7bc   :  { %1717 = vpow2.f32 %v1593_v46 }
 0x7bd   :  { %v751_v42 = vor.u32 1.1754944e-38, %v750_v39  ;;  %vm749_vm11 = vcmp.eq.f32.partialorder %v748_v40, 8.507059e+37 }
 0x7c1   :  { %v1716_v34 = vpop.eup %1715 }
 0x7c2   :  { %v740_v35 = vmul.f32 %v1716_v34, %v738_v33  ;;  %vm745_vm8 = vweird.f32 %v1716_v34  ;;  %v1718_v47 = vpop.eup %1717 }
 0x7c3   :  { %vm746_vm10 = vmor %vm744_vm9, %vm745_vm8  ;;  %v671_v49 = vadd.f32 1.0, %v1718_v47 }
 0x7c4   :  { %v741_v36 = vsub.f32 1.0, %v740_v35 }
 0x7c5   :  { %1719 = vrcp.f32 %v671_v49  ;;  %v683_v51 = vand.u32 2147483648, %v671_v49  ;;  %vm677_vm13 = vweird.f32 %v671_v49  ;;  %v681_v61 = vand.u32 2147483647, %v671_v49 }
 0x7c6   :  { %v742_v37 = vmul.f32 %v1716_v34, %v741_v36 }
 0x7c7   :  { %v684_v0 = vor.u32 1.1754944e-38, %v683_v51  ;;  %vm682_vm15 = vcmp.eq.f32.partialorder %v681_v61, 8.507059e+37 }
 0x7c8   :  { %v743_v38 = vadd.f32 %v1716_v34, %v742_v37 }
 0x7ca   :  { %v747_v41 = vsel %vm746_vm10, %v1716_v34, %v743_v38 }
 0x7cb   :  { %v752_v44 = vsel %vm749_vm11, %v751_v42, %v747_v41  ;;  %v1720_v50 = vpop.eup %1719 }
 0x7cc   :  { %v673_v52 = vmul.f32 %v1720_v50, %v671_v49  ;;  %vm678_vm12 = vweird.f32 %v1720_v50  ;;  %v755_v8 = vmul.f32 %v752_v44, %v2047_v1 }
 0x7cd   :  { %vm679_vm14 = vmor %vm677_vm13, %vm678_vm12 }
 0x7ce   :  { %v674_v54 = vsub.f32 1.0, %v673_v52 }
 0x7d0   :  { %v675_v55 = vmul.f32 %v1720_v50, %v674_v54 }
 0x7d2   :  { %v676_v60 = vadd.f32 %v1720_v50, %v675_v55 }
 0x7d4   :  { %v680_v63 = vsel %vm679_vm14, %v1720_v50, %v676_v60 }
 0x7d5   :  { %v685_v3 = vsel %vm682_vm15, %v684_v0, %v680_v63 }
 0x7d6   :  { %v688_v12 = vmul.f32 %v685_v3, %v2052_v7  ;;  %v1481_v7 = vld [vmem:[%s2321_s0 + $0x20] sm:$0xf] }
 0x7d7   :  { %v1482_v22 = vor.u32 %v1633_v20, %v1481_v7 }
 0x7d9   :  { %227 = vmatmul.bf16.gmra.mxu0 %v1482_v22 }
 0x7f7   :  { %v758_v43 = vpop.permute.xlu2 %757 }
 0x7f8   :  { %v760_v45 = vmul.f32 %v758_v43, %v752_v44 }
 0x7fa   :  { %762 = vrot.lane.b32.xlu1 %v760_v45, %s1800_s16 }
 0x81b   :  { %v257_v32 = vpop.f32.mrf.mxu1 }
 0x82a   :  { %v691_v2 = vpop.permute.xlu0 %690 }
 0x82b   :  { %v693_v6 = vmul.f32 %v691_v2, %v685_v3 }
 0x82d   :  { %695 = vrot.lane.b32.xlu2 %v693_v6, %s1800_s16 }
 0x856   :  { %v228_v31 = vpop.f32.mrf.mxu0 }
 0x857   :  { %v258_v33 = vadd.f32 %v257_v32, %v228_v31 }
 0x859   :  { %v842_v34 = vadd.f32 %v1937_v27, %v258_v33 }
 0x86c   :  { %v763_v9 = vpop.permute.xlu1 %762 }
 0x86d   :  { %v2078_v48 = vadd.f32 %v763_v9, %v755_v8 }
 0x86f   :  { %1721 = vtanh.f32 %v2078_v48 }
 0x875   :  { %v1722_v11 = vpop.eup %1721 }
 0x876   :  { %768 = vrot.lane.b32.xlu0 %v1722_v11, %s1800_s16 }
 0x887   :  { %v696_v53 = vpop.permute.xlu2 %695 }
 0x888   :  { %v2083_v14 = vadd.f32 %v696_v53, %v688_v12 }
 0x88a   :  { %1723 = vtanh.f32 %v2083_v14 }
 0x890   :  { %v1724_v15 = vpop.eup %1723 }
 0x891   :  { %701 = vrot.lane.b32.xlu1 %v1724_v15, %s1800_s16 }
 0x8e8   :  { %v769_v16 = vpop.permute.xlu0 %768 }
 0x8e9   :  { %v771_v1 = vmul.f32 %v769_v16, %v752_v44 }
 0x8eb   :  { %v843_v17 = vpack.c.bf16 %v771_v1, %v771_v1  ;;  %773 = vrot.lane.b32.xlu0 %v771_v1, %s1801_s17 }
 0x8ed   :  { %845 = vrot.lane.b32.xlu2 %v843_v17, %s1801_s17 }
 0x903   :  { %v702_v18 = vpop.permute.xlu1 %701 }
 0x904   :  { %v2089_v19 = vmul.f32 %v702_v18, %v685_v3 }
 0x906   :  { %776 = vrot.lane.b32.xlu1 %v2089_v19, %s1802_s27 }
 0x947   :  { %v846_v25 = vpop.permute.xlu2 %845 }
 0x948   :  { %1598 = vmatmul.msk.bf16.vlgmr.msra.gmra.mxu2 %vm309_vm4, %v846_v25 }
 0x949   :  { %1114 = vmatpush.bf16.msra.mxu2 %v1873_v4 }
 0x94d   :  { %1115 = vmatpush.bf16.msra.mxu2 %v1879_v5 }
 0x95d   :  { %v774_v26 = vpop.permute.xlu0 %773 }
 0x978   :  { %v777_v28 = vpop.permute.xlu1 %776 }
 0x979   :  { %v779_v29 = vsel %vm309_vm4, %v774_v26, %v777_v28 }
 0x97a   :  { %v780_v30 = vpack.c.bf16 %v779_v29, %v779_v29 }
 0x97c   :  { %1596 = vmatmul.msk.bf16.vlgmr.msrb.gmra.mxu3 %vm394_vm5, %v780_v30 }
 0x97d   :  { %1175 = vmatpush.bf16.msrb.mxu3 %v1951_v56 }
 0x981   :  { %1176 = vmatpush.bf16.msrb.mxu3 %v1957_v57 }
 0x985   :  { %1177 = vmatpush.bf16.msrb.mxu3 %v1964_v58 }
 0x989   :  { %1178 = vmatpush.bf16.msrb.mxu3 %v1972_v59 }
 0x9cb   :  { %v859_v35 = vpop.f32.mrf.mxu2 }
 0x9cc   :  { %v863_v36 = vadd.f32 %v859_v35, %v842_v34  ;;  %v230_v34 = vpop.f32.mrf.mxu0  ;;  %v259_v35 = vpop.f32.mrf.mxu1 }
 0x9ce   :  { %1725 = vtanh.f32 %v863_v36  ;;  %v1599_v57 = vmul.f32 -1.442695, %v863_v36  ;;  %v260_v36 = vadd.f32 %v259_v35, %v230_v34 }
 0x9d3   :  { %v861_v37 = vpop.f32.mrf.mxu2 }
 0x9d4   :  { %v1726_v38 = vpop.eup %1725  ;;  %v971_v37 = vadd.f32 %v1937_v27, %v260_v36 }
 0x9d5   :  { %886 = vrot.lane.b32.xlu2 %v1726_v38, %s1800_s16 }
 0x9ff   :  { %v793_v39 = vpop.f32.mrf.mxu3 }
 0xa00   :  { %v794_v56 = vadd.f32 %v1998_v10, %v793_v39 }
 0xa02   :  { %1727 = vtanh.f32 %v794_v56  ;;  %v1597_v51 = vmul.f32 -1.442695, %v794_v56 }
 0xa03   :  { %1729 = vpow2.f32 %v1599_v57 }
 0xa07   :  { %v795_v58 = vpop.f32.mrf.mxu3 }
 0xa08   :  { %v1728_v59 = vpop.eup %1727 }
 0xa09   :  { %819 = vrot.lane.b32.xlu0 %v1728_v59, %s1800_s16  ;;  %v1730_v40 = vpop.eup %1729 }
 0xa0a   :  { %v867_v41 = vadd.f32 1.0, %v1730_v40 }
 0xa0c   :  { %1731 = vrcp.f32 %v867_v41  ;;  %v879_v47 = vand.u32 2147483648, %v867_v41  ;;  %vm873_vm1 = vweird.f32 %v867_v41  ;;  %v877_v49 = vand.u32 2147483647, %v867_v41 }
 0xa0d   :  { %1733 = vpow2.f32 %v1597_v51 }
 0xa0e   :  { %v880_v52 = vor.u32 1.1754944e-38, %v879_v47  ;;  %vm878_vm3 = vcmp.eq.f32.partialorder %v877_v49, 8.507059e+37 }
 0xa12   :  { %v1732_v42 = vpop.eup %1731 }
 0xa13   :  { %v869_v43 = vmul.f32 %v1732_v42, %v867_v41  ;;  %vm874_vm0 = vweird.f32 %v1732_v42  ;;  %v1734_v61 = vpop.eup %1733 }
 0xa14   :  { %vm875_vm2 = vmor %vm873_vm1, %vm874_vm0  ;;  %v800_v63 = vadd.f32 1.0, %v1734_v61 }
 0xa15   :  { %v870_v44 = vsub.f32 1.0, %v869_v43 }
 0xa16   :  { %1735 = vrcp.f32 %v800_v63  ;;  %v812_v9 = vand.u32 2147483648, %v800_v63  ;;  %vm806_vm7 = vweird.f32 %v800_v63  ;;  %v810_v11 = vand.u32 2147483647, %v800_v63 }
 0xa17   :  { %v871_v45 = vmul.f32 %v1732_v42, %v870_v44 }
 0xa18   :  { %v813_v53 = vor.u32 1.1754944e-38, %v812_v9  ;;  %vm811_vm9 = vcmp.eq.f32.partialorder %v810_v11, 8.507059e+37 }
 0xa19   :  { %v872_v46 = vadd.f32 %v1732_v42, %v871_v45 }
 0xa1b   :  { %v876_v50 = vsel %vm875_vm2, %v1732_v42, %v872_v46 }
 0xa1c   :  { %v881_v55 = vsel %vm878_vm3, %v880_v52, %v876_v50  ;;  %v1736_v0 = vpop.eup %1735 }
 0xa1d   :  { %v802_v2 = vmul.f32 %v1736_v0, %v800_v63  ;;  %vm807_vm6 = vweird.f32 %v1736_v0  ;;  %v884_v17 = vmul.f32 %v881_v55, %v2078_v48 }
 0xa1e   :  { %vm808_vm8 = vmor %vm806_vm7, %vm807_vm6 }
 0xa1f   :  { %v803_v3 = vsub.f32 1.0, %v802_v2 }
 0xa21   :  { %v804_v6 = vmul.f32 %v1736_v0, %v803_v3 }
 0xa23   :  { %v805_v8 = vadd.f32 %v1736_v0, %v804_v6 }
 0xa25   :  { %v809_v12 = vsel %vm808_vm8, %v1736_v0, %v805_v8 }
 0xa26   :  { %v814_v16 = vsel %vm811_vm9, %v813_v53, %v809_v12 }
 0xa27   :  { %v817_v21 = vmul.f32 %v814_v16, %v2083_v14 }
 0xa2f   :  { %v887_v54 = vpop.permute.xlu2 %886 }
 0xa30   :  { %v889_v60 = vmul.f32 %v887_v54, %v881_v55 }
 0xa32   :  { %891 = vrot.lane.b32.xlu1 %v889_v60, %s1800_s16 }
 0xa7b   :  { %v820_v15 = vpop.permute.xlu0 %819 }
 0xa7c   :  { %v822_v1 = vmul.f32 %v820_v15, %v814_v16 }
 0xa7e   :  { %824 = vrot.lane.b32.xlu2 %v822_v1, %s1800_s16 }
 0xaa4   :  { %v892_v18 = vpop.permute.xlu1 %891 }
 0xaa5   :  { %v2121_v7 = vadd.f32 %v892_v18, %v884_v17 }
 0xaa7   :  { %1737 = vtanh.f32 %v2121_v7 }
 0xaad   :  { %v1738_v20 = vpop.eup %1737 }
 0xaae   :  { %897 = vrot.lane.b32.xlu0 %v1738_v20, %s1800_s16 }
 0xad8   :  { %v825_v22 = vpop.permute.xlu2 %824 }
 0xad9   :  { %v2126_v23 = vadd.f32 %v825_v22, %v817_v21 }
 0xadb   :  { %1739 = vtanh.f32 %v2126_v23 }
 0xae1   :  { %v1740_v24 = vpop.eup %1739 }
 0xae2   :  { %830 = vrot.lane.b32.xlu1 %v1740_v24, %s1800_s16 }
 0xb20   :  { %v898_v25 = vpop.permute.xlu0 %897 }
 0xb21   :  { %v900_v48 = vmul.f32 %v898_v25, %v881_v55 }
 0xb23   :  { %v972_v26 = vpack.c.bf16 %v900_v48, %v900_v48  ;;  %902 = vrot.lane.b32.xlu0 %v900_v48, %s1801_s17 }
 0xb25   :  { %974 = vrot.lane.b32.xlu2 %v972_v26, %s1801_s17 }
 0xb54   :  { %v831_v28 = vpop.permute.xlu1 %830 }
 0xb55   :  { %v2132_v29 = vmul.f32 %v831_v28, %v814_v16 }
 0xb57   :  { %905 = vrot.lane.b32.xlu1 %v2132_v29, %s1802_s27 }
 0xb7f   :  { %v975_v14 = vpop.permute.xlu2 %974 }
 0xb80   :  { %1602 = vmatmul.msk.bf16.vlgmr.msrb.gmra.mxu2 %vm309_vm4, %v975_v14  ;;  %v1489_v14 = vld [vmem:[%s2321_s0 + $0x30] sm:$0xf] }
 0xb81   :  { %1243 = vmatpush.bf16.msrb.mxu2 %v1873_v4 }
 0xb85   :  { %1244 = vmatpush.bf16.msrb.mxu2 %v1879_v5 }
 0xb95   :  { %v903_v30 = vpop.permute.xlu0 %902 }
 0xbc9   :  { %v906_v31 = vpop.permute.xlu1 %905 }
 0xbca   :  { %v908_v32 = vsel %vm309_vm4, %v903_v30, %v906_v31  ;;  %v1634_v30 = vld [vmem:[%s2321_s0 + $0x34] sm:$0xf] }
 0xbcb   :  { %v909_v33 = vpack.c.bf16 %v908_v32, %v908_v32  ;;  %v1491_v32 = vld [vmem:[%s2321_s0 + $0x38] sm:$0xf0] }
 0xbcd   :  { %1600 = vmatmul.msk.bf16.vlgmr.msra.gmra.mxu3 %vm394_vm5, %v909_v33  ;;  %v1494_v33 = vor.u32 %v1634_v30, %v1491_v32 }
 0xbcf   :  { %261 = vmatmul.bf16.gmra.mxu1 %v1494_v33 }
 0xc03   :  { %v988_v38 = vpop.f32.mrf.mxu2 }
 0xc04   :  { %v992_v39 = vadd.f32 %v988_v38, %v971_v37 }
 0xc06   :  { %1741 = vtanh.f32 %v992_v39  ;;  %v1603_v4 = vmul.f32 -1.442695, %v992_v39 }
 0xc08   :  { %1743 = vpow2.f32 %v1603_v4 }
 0xc0b   :  { %v990_v56 = vpop.f32.mrf.mxu2 }
 0xc0c   :  { %v1742_v57 = vpop.eup %1741 }
 0xc0d   :  { %1015 = vrot.lane.b32.xlu2 %v1742_v57, %s1800_s16 }
 0xc0e   :  { %v1744_v5 = vpop.eup %1743 }
 0xc0f   :  { %v996_v58 = vadd.f32 1.0, %v1744_v5 }
 0xc11   :  { %1745 = vrcp.f32 %v996_v58  ;;  %v1008_v47 = vand.u32 2147483648, %v996_v58  ;;  %vm1002_vm11 = vweird.f32 %v996_v58  ;;  %v1006_v49 = vand.u32 2147483647, %v996_v58 }
 0xc13   :  { %v1009_v52 = vor.u32 1.1754944e-38, %v1008_v47  ;;  %vm1007_vm13 = vcmp.eq.f32.partialorder %v1006_v49, 8.507059e+37 }
 0xc17   :  { %v1746_v40 = vpop.eup %1745 }
 0xc18   :  { %v998_v42 = vmul.f32 %v1746_v40, %v996_v58  ;;  %vm1003_vm10 = vweird.f32 %v1746_v40  ;;  %v2181_v58 = vld [vmem:[%s2322_s3] ss:$0 sm:$0xff] }
 0xc19   :  { %vm1004_vm12 = vmor %vm1002_vm11, %vm1003_vm10 }
 0xc1a   :  { %v999_v27 = vsub.f32 1.0, %v998_v42 }
 0xc1c   :  { %v1000_v45 = vmul.f32 %v1746_v40, %v999_v27 }
 0xc1e   :  { %v1001_v46 = vadd.f32 %v1746_v40, %v1000_v45 }
 0xc20   :  { %v1005_v50 = vsel %vm1004_vm12, %v1746_v40, %v1001_v46 }
 0xc21   :  { %v1010_v55 = vsel %vm1007_vm13, %v1009_v52, %v1005_v50 }
 0xc22   :  { %v1013_v17 = vmul.f32 %v1010_v55, %v2121_v7 }
 0xc4c   :  { %v262_v4 = vpop.f32.mrf.mxu1 }
 0xc50   :  { %v922_v59 = vpop.f32.mrf.mxu3 }
 0xc51   :  { %v923_v41 = vadd.f32 %v1998_v10, %v922_v59 }
 0xc53   :  { %1747 = vtanh.f32 %v923_v41  ;;  %v1601_v51 = vmul.f32 -1.442695, %v923_v41 }
 0xc55   :  { %1749 = vpow2.f32 %v1601_v51 }
 0xc58   :  { %v924_v43 = vpop.f32.mrf.mxu3 }
 0xc59   :  { %v1748_v44 = vpop.eup %1747 }
 0xc5a   :  { %948 = vrot.lane.b32.xlu0 %v1748_v44, %s1800_s16 }
 0xc5b   :  { %v1750_v61 = vpop.eup %1749 }
 0xc5c   :  { %v929_v63 = vadd.f32 1.0, %v1750_v61 }
 0xc5e   :  { %1751 = vrcp.f32 %v929_v63  ;;  %v941_v9 = vand.u32 2147483648, %v929_v63  ;;  %vm935_vm15 = vweird.f32 %v929_v63  ;;  %v939_v11 = vand.u32 2147483647, %v929_v63 }
 0xc60   :  { %v942_v53 = vor.u32 1.1754944e-38, %v941_v9  ;;  %vm940_vm1 = vcmp.eq.f32.partialorder %v939_v11, 8.507059e+37 }
 0xc64   :  { %v1752_v0 = vpop.eup %1751 }
 0xc65   :  { %v931_v2 = vmul.f32 %v1752_v0, %v929_v63  ;;  %vm936_vm14 = vweird.f32 %v1752_v0 }
 0xc66   :  { %vm937_vm0 = vmor %vm935_vm15, %vm936_vm14 }
 0xc67   :  { %v1016_v54 = vpop.permute.xlu2 %1015  ;;  %v932_v3 = vsub.f32 1.0, %v931_v2 }
 0xc68   :  { %v1018_v60 = vmul.f32 %v1016_v54, %v1010_v55 }
 0xc69   :  { %v933_v6 = vmul.f32 %v1752_v0, %v932_v3 }
 0xc6a   :  { %1020 = vrot.lane.b32.xlu1 %v1018_v60, %s1800_s16 }
 0xc6b   :  { %v934_v8 = vadd.f32 %v1752_v0, %v933_v6 }
 0xc6d   :  { %v938_v12 = vsel %vm937_vm0, %v1752_v0, %v934_v8 }
 0xc6e   :  { %v943_v16 = vsel %vm940_vm1, %v942_v53, %v938_v12 }
 0xc6f   :  { %v946_v22 = vmul.f32 %v943_v16, %v2126_v23  ;;  %v1635_v23 = vld [vmem:[%s2321_s0 + $0x34] sm:$0xf0] }
 0xc70   :  { %v1490_v31 = vor.u32 %v1635_v23, %v1489_v14 }
 0xc72   :  { %232 = vmatmul.bf16.gmra.mxu0 %v1490_v31 }
 0xccc   :  { %v949_v15 = vpop.permute.xlu0 %948 }
 0xccd   :  { %v951_v1 = vmul.f32 %v949_v15, %v943_v16 }
 0xccf   :  { %953 = vrot.lane.b32.xlu2 %v951_v1, %s1800_s16 }
 0xcdc   :  { %v1021_v18 = vpop.permute.xlu1 %1020 }
 0xcdd   :  { %v2148_v20 = vadd.f32 %v1021_v18, %v1013_v17 }
 0xcdf   :  { %1753 = vtanh.f32 %v2148_v20 }
 0xce5   :  { %v1754_v21 = vpop.eup %1753 }
 0xce6   :  { %1026 = vrot.lane.b32.xlu0 %v1754_v21, %s1800_s16 }
 0xcef   :  { %v233_v57 = vpop.f32.mrf.mxu0 }
 0xcf0   :  { %v263_v5 = vadd.f32 %v262_v4, %v233_v57 }
 0xcf2   :  { %v1100_v59 = vadd.f32 %v2181_v58, %v263_v5 }
 0xcf7   :  { %v2185_v44 = vpop.f32.mrf.mxu0 }
 0xd29   :  { %v954_v24 = vpop.permute.xlu2 %953 }
 0xd2a   :  { %v2153_v25 = vadd.f32 %v954_v24, %v946_v22 }
 0xd2c   :  { %1755 = vtanh.f32 %v2153_v25 }
 0xd32   :  { %v1756_v48 = vpop.eup %1755 }
 0xd33   :  { %959 = vrot.lane.b32.xlu1 %v1756_v48, %s1800_s16 }
 0xd58   :  { %v1027_v26 = vpop.permute.xlu0 %1026 }
 0xd59   :  { %v1029_v7 = vmul.f32 %v1027_v26, %v1010_v55 }
 0xd5b   :  { %v1101_v28 = vpack.c.bf16 %v1029_v7, %v1029_v7  ;;  %1031 = vrot.lane.b32.xlu0 %v1029_v7, %s1801_s17 }
 0xd5d   :  { %1103 = vrot.lane.b32.xlu2 %v1101_v28, %s1801_s17 }
 0xda5   :  { %v960_v34 = vpop.permute.xlu1 %959 }
 0xda6   :  { %v2171_v35 = vmul.f32 %v960_v34, %v943_v16 }
 0xda8   :  { %1034 = vrot.lane.b32.xlu1 %v2171_v35, %s1802_s27 }
 0xdb7   :  { %v1104_v36 = vpop.permute.xlu2 %1103 }
 0xdb8   :  { %1606 = vmatmul.msk.bf16.vlgmr.msra.gmra.mxu2 %vm309_vm4, %v1104_v36 }
 0xdcd   :  { %v1032_v37 = vpop.permute.xlu0 %1031 }
 0xe1a   :  { %v1035_v38 = vpop.permute.xlu1 %1034 }
 0xe1b   :  { %v1037_v39 = vsel %vm309_vm4, %v1032_v37, %v1035_v38 }
 0xe1c   :  { %v1038_v56 = vpack.c.bf16 %v1037_v39, %v1037_v39 }
 0xe1e   :  { %1604 = vmatmul.msk.bf16.vlgmr.msrb.gmra.mxu0 %vm394_vm5, %v1038_v56 }
 0xe3b   :  { %v1117_v40 = vpop.f32.mrf.mxu2 }
 0xe3c   :  { %v1121_v41 = vadd.f32 %v1117_v40, %v1100_v59  ;;  %v264_v59 = vpop.f32.mrf.mxu1 }
 0xe3d   :  { %v265_v40 = vadd.f32 %v264_v59, %v2185_v44 }
 0xe3e   :  { %1757 = vtanh.f32 %v1121_v41  ;;  %v1607_v27 = vmul.f32 -1.442695, %v1121_v41 }
 0xe3f   :  { %v1229_v41 = vadd.f32 %v2181_v58, %v265_v40 }
 0xe40   :  { %1759 = vpow2.f32 %v1607_v27 }
 0xe43   :  { %v1119_v42 = vpop.f32.mrf.mxu2 }
 0xe44   :  { %v1758_v43 = vpop.eup %1757 }
 0xe45   :  { %1144 = vrot.lane.b32.xlu0 %v1758_v43, %s1800_s16 }
 0xe46   :  { %v1760_v45 = vpop.eup %1759 }
 0xe47   :  { %v1125_v46 = vadd.f32 1.0, %v1760_v45 }
 0xe49   :  { %1761 = vrcp.f32 %v1125_v46  ;;  %v1137_v63 = vand.u32 2147483648, %v1125_v46  ;;  %vm1131_vm3 = vweird.f32 %v1125_v46  ;;  %v1135_v0 = vand.u32 2147483647, %v1125_v46 }
 0xe4b   :  { %v1138_v3 = vor.u32 1.1754944e-38, %v1137_v63  ;;  %vm1136_vm7 = vcmp.eq.f32.partialorder %v1135_v0, 8.507059e+37 }
 0xe4f   :  { %v1762_v50 = vpop.eup %1761 }
 0xe50   :  { %v1127_v55 = vmul.f32 %v1762_v50, %v1125_v46  ;;  %vm1132_vm2 = vweird.f32 %v1762_v50 }
 0xe51   :  { %vm1133_vm6 = vmor %vm1131_vm3, %vm1132_vm2 }
 0xe52   :  { %v1128_v60 = vsub.f32 1.0, %v1127_v55 }
 0xe54   :  { %v1129_v51 = vmul.f32 %v1762_v50, %v1128_v60 }
 0xe56   :  { %v1130_v61 = vadd.f32 %v1762_v50, %v1129_v51 }
 0xe58   :  { %v1134_v2 = vsel %vm1133_vm6, %v1762_v50, %v1130_v61 }
 0xe9b   :  { %v1051_v47 = vpop.f32.mrf.mxu0 }
 0xe9c   :  { %v1052_v49 = vadd.f32 %v1998_v10, %v1051_v47  ;;  %v1139_v10 = vsel %vm1136_vm7, %v1138_v3, %v1134_v2 }
 0xe9d   :  { %v1142_v28 = vmul.f32 %v1139_v10, %v2148_v20 }
 0xe9e   :  { %1763 = vtanh.f32 %v1052_v49  ;;  %v1605_v9 = vmul.f32 -1.442695, %v1052_v49 }
 0xea0   :  { %1765 = vpow2.f32 %v1605_v9 }
 0xea3   :  { %v1053_v52 = vpop.f32.mrf.mxu0 }
 0xea4   :  { %v1764_v54 = vpop.eup %1763  ;;  %v2216_v52 = vld [vmem:[%s2324_s5] ss:$0 sm:$0xff] }
 0xea5   :  { %1077 = vrot.lane.b32.xlu2 %v1764_v54, %s1800_s16 }
 0xea6   :  { %v1766_v11 = vpop.eup %1765 }
 0xea7   :  { %v1058_v12 = vadd.f32 1.0, %v1766_v11 }
 0xea9   :  { %1767 = vrcp.f32 %v1058_v12  ;;  %v1070_v18 = vand.u32 2147483648, %v1058_v12  ;;  %vm1064_vm9 = vweird.f32 %v1058_v12  ;;  %v1068_v21 = vand.u32 2147483647, %v1058_v12 }
 0xeab   :  { %v1071_v24 = vor.u32 1.1754944e-38, %v1070_v18  ;;  %vm1069_vm11 = vcmp.eq.f32.partialorder %v1068_v21, 8.507059e+37 }
 0xeaf   :  { %v1768_v53 = vpop.eup %1767 }
 0xeb0   :  { %v1060_v15 = vmul.f32 %v1768_v53, %v1058_v12  ;;  %vm1065_vm8 = vweird.f32 %v1768_v53 }
 0xeb1   :  { %vm1066_vm10 = vmor %vm1064_vm9, %vm1065_vm8 }
 0xeb2   :  { %v1061_v16 = vsub.f32 1.0, %v1060_v15 }
 0xeb4   :  { %v1062_v1 = vmul.f32 %v1768_v53, %v1061_v16 }
 0xeb6   :  { %v1063_v17 = vadd.f32 %v1768_v53, %v1062_v1 }
 0xeb7   :  { %v1145_v6 = vpop.permute.xlu0 %1144 }
 0xeb8   :  { %v1147_v8 = vmul.f32 %v1145_v6, %v1139_v10  ;;  %v1067_v22 = vsel %vm1066_vm10, %v1768_v53, %v1063_v17 }
 0xeb9   :  { %v1072_v48 = vsel %vm1069_vm11, %v1071_v24, %v1067_v22 }
 0xeba   :  { %1149 = vrot.lane.b32.xlu2 %v1147_v8, %s1800_s16  ;;  %v1075_v31 = vmul.f32 %v1072_v48, %v2153_v25 }
 0xeff   :  { %v1078_v26 = vpop.permute.xlu2 %1077 }
 0xf00   :  { %v1080_v7 = vmul.f32 %v1078_v26, %v1072_v48 }
 0xf02   :  { %1082 = vrot.lane.b32.xlu1 %v1080_v7, %s1800_s16 }
 0xf14   :  { %v1150_v14 = vpop.permute.xlu2 %1149 }
 0xf15   :  { %v2192_v23 = vadd.f32 %v1150_v14, %v1142_v28 }
 0xf17   :  { %1769 = vtanh.f32 %v2192_v23 }
 0xf1d   :  { %v1770_v30 = vpop.eup %1769 }
 0xf1e   :  { %1155 = vrot.lane.b32.xlu1 %v1770_v30, %s1800_s16 }
 0xf74   :  { %v1083_v32 = vpop.permute.xlu1 %1082 }
 0xf75   :  { %v2197_v33 = vadd.f32 %v1083_v32, %v1075_v31 }
 0xf77   :  { %1771 = vtanh.f32 %v2197_v33 }
 0xf7d   :  { %v1772_v34 = vpop.eup %1771 }
 0xf7e   :  { %1088 = vrot.lane.b32.xlu0 %v1772_v34, %s1800_s16 }
 0xf90   :  { %v1156_v36 = vpop.permute.xlu1 %1155 }
 0xf91   :  { %v1158_v20 = vmul.f32 %v1156_v36, %v1139_v10 }
 0xf93   :  { %v1230_v37 = vpack.c.bf16 %v1158_v20, %v1158_v20  ;;  %1160 = vrot.lane.b32.xlu2 %v1158_v20, %s1801_s17 }
 0xf95   :  { %1232 = vrot.lane.b32.xlu1 %v1230_v37, %s1801_s17 }
 0xfed   :  { %v1161_v56 = vpop.permute.xlu2 %1160 }
 0xff0   :  { %v1089_v38 = vpop.permute.xlu0 %1088 }
 0xff1   :  { %v2203_v39 = vmul.f32 %v1089_v38, %v1072_v48 }
 0xff3   :  { %1163 = vrot.lane.b32.xlu0 %v2203_v39, %s1802_s27 }
0x1007   :  { %v1233_v25 = vpop.permute.xlu1 %1232 }
0x1008   :  { %1610 = vmatmul.msk.bf16.vlgmr.msrb.gmra.mxu2 %vm309_vm4, %v1233_v25 }
0x1065   :  { %v1164_v57 = vpop.permute.xlu0 %1163 }
0x1066   :  { %v1166_v4 = vsel %vm309_vm4, %v1161_v56, %v1164_v57 }
0x1067   :  { %v1167_v5 = vpack.c.bf16 %v1166_v4, %v1166_v4 }
0x1069   :  { %1608 = vmatmul.msk.bf16.vlgmr.msrb.gmra.mxu3 %vm394_vm5, %v1167_v5 }
0x108b   :  { %v1246_v42 = vpop.f32.mrf.mxu2 }
0x108c   :  { %v1250_v43 = vadd.f32 %v1246_v42, %v1229_v41 }
0x108e   :  { %1773 = vtanh.f32 %v1250_v43  ;;  %v1611_v46 = vmul.f32 -1.442695, %v1250_v43 }
0x1090   :  { %1775 = vpow2.f32 %v1611_v46 }
0x1093   :  { %v1248_v27 = vpop.f32.mrf.mxu2 }
0x1094   :  { %v1774_v45 = vpop.eup %1773 }
0x1095   :  { %1273 = vrot.lane.b32.xlu0 %v1774_v45, %s1800_s16 }
0x1096   :  { %v1776_v47 = vpop.eup %1775 }
0x1097   :  { %v1254_v49 = vadd.f32 1.0, %v1776_v47 }
0x1099   :  { %1777 = vrcp.f32 %v1254_v49  ;;  %v1266_v0 = vand.u32 2147483648, %v1254_v49  ;;  %vm1260_vm13 = vweird.f32 %v1254_v49  ;;  %v1264_v2 = vand.u32 2147483647, %v1254_v49 }
0x109b   :  { %v1267_v6 = vor.u32 1.1754944e-38, %v1266_v0  ;;  %vm1265_vm15 = vcmp.eq.f32.partialorder %v1264_v2, 8.507059e+37 }
0x109f   :  { %v1778_v44 = vpop.eup %1777 }
0x10a0   :  { %v1256_v55 = vmul.f32 %v1778_v44, %v1254_v49  ;;  %vm1261_vm12 = vweird.f32 %v1778_v44 }
0x10a1   :  { %vm1262_vm14 = vmor %vm1260_vm13, %vm1261_vm12 }
0x10a2   :  { %v1257_v51 = vsub.f32 1.0, %v1256_v55 }
0x10a4   :  { %v1258_v61 = vmul.f32 %v1778_v44, %v1257_v51 }
0x10a6   :  { %v1259_v63 = vadd.f32 %v1778_v44, %v1258_v61 }
0x10a8   :  { %v1263_v3 = vsel %vm1262_vm14, %v1778_v44, %v1259_v63  ;;  %v1659_v63 = vld [vmem:[%s2326_s6 + $0x8] sm:$0xff] }
0x10a9   :  { %v1268_v8 = vsel %vm1265_vm15, %v1267_v6, %v1263_v3  ;;  %1660 = vmatpush.bf16.msra.mxu3 %v1659_v63  ;;  %1420 = vmatpush.bf16.msrb.mxu1 %v1659_v63 }
0x10aa   :  { %v1271_v14 = vmul.f32 %v1268_v8, %v2192_v23 }
0x10ec   :  { %v1180_v50 = vpop.f32.mrf.mxu3 }
0x10ed   :  { %v1181_v58 = vadd.f32 %v2216_v52, %v1180_v50 }
0x10ef   :  { %1779 = vtanh.f32 %v1181_v58  ;;  %v1609_v11 = vmul.f32 -1.442695, %v1181_v58 }
0x10f1   :  { %1781 = vpow2.f32 %v1609_v11 }
0x10f4   :  { %v1182_v54 = vpop.f32.mrf.mxu3 }
0x10f5   :  { %v1780_v60 = vpop.eup %1779 }
0x10f6   :  { %1206 = vrot.lane.b32.xlu2 %v1780_v60, %s1800_s16 }
0x10f7   :  { %v1782_v12 = vpop.eup %1781 }
0x10f8   :  { %v1187_v53 = vadd.f32 1.0, %v1782_v12 }
0x10fa   :  { %1783 = vrcp.f32 %v1187_v53  ;;  %v1199_v21 = vand.u32 2147483648, %v1187_v53  ;;  %vm1193_vm1 = vweird.f32 %v1187_v53  ;;  %v1197_v22 = vand.u32 2147483647, %v1187_v53 }
0x10fc   :  { %v1200_v48 = vor.u32 1.1754944e-38, %v1199_v21  ;;  %vm1198_vm3 = vcmp.eq.f32.partialorder %v1197_v22, 8.507059e+37  ;;  %v1668_v21 = vld [vmem:[%s2327_s7] ss:$0 sm:$0xff] }
0x1100   :  { %v1784_v15 = vpop.eup %1783 }
0x1101   :  { %v1189_v16 = vmul.f32 %v1784_v15, %v1187_v53  ;;  %vm1194_vm0 = vweird.f32 %v1784_v15 }
0x1102   :  { %vm1195_vm2 = vmor %vm1193_vm1, %vm1194_vm0 }
0x1103   :  { %v1190_v1 = vsub.f32 1.0, %v1189_v16 }
0x1105   :  { %v1191_v17 = vmul.f32 %v1784_v15, %v1190_v1 }
0x1107   :  { %v1274_v10 = vpop.permute.xlu0 %1273  ;;  %v1192_v18 = vadd.f32 %v1784_v15, %v1191_v17 }
0x1108   :  { %v1276_v9 = vmul.f32 %v1274_v10, %v1268_v8 }
0x1109   :  { %v1196_v24 = vsel %vm1195_vm2, %v1784_v15, %v1192_v18 }
0x110a   :  { %1278 = vrot.lane.b32.xlu2 %v1276_v9, %s1800_s16  ;;  %v1201_v7 = vsel %vm1198_vm3, %v1200_v48, %v1196_v24 }
0x110b   :  { %v1204_v34 = vmul.f32 %v1201_v7, %v2197_v33 }
0x1150   :  { %v1207_v26 = vpop.permute.xlu2 %1206 }
0x1151   :  { %v1209_v28 = vmul.f32 %v1207_v26, %v1201_v7 }
0x1153   :  { %1211 = vrot.lane.b32.xlu1 %v1209_v28, %s1800_s16 }
0x1164   :  { %v1279_v30 = vpop.permute.xlu2 %1278 }
0x1165   :  { %v2223_v31 = vadd.f32 %v1279_v30, %v1271_v14 }
0x1167   :  { %1785 = vtanh.f32 %v2223_v31 }
0x116d   :  { %v1786_v32 = vpop.eup %1785 }
0x116e   :  { %1284 = vrot.lane.b32.xlu1 %v1786_v32, %s1800_s16 }
0x11c5   :  { %v1212_v36 = vpop.permute.xlu1 %1211 }
0x11c6   :  { %v2228_v20 = vadd.f32 %v1212_v36, %v1204_v34 }
0x11c8   :  { %1787 = vtanh.f32 %v2228_v20 }
0x11ce   :  { %v1788_v37 = vpop.eup %1787 }
0x11cf   :  { %1217 = vrot.lane.b32.xlu0 %v1788_v37, %s1800_s16 }
0x11e0   :  { %v1285_v38 = vpop.permute.xlu1 %1284 }
0x11e1   :  { %v1287_v23 = vmul.f32 %v1285_v38, %v1268_v8 }
0x11e3   :  { %1289 = vrot.lane.b32.xlu2 %v1287_v23, %s1801_s17 }
0x123d   :  { %v1290_v25 = vpop.permute.xlu2 %1289 }
0x123e   :  { %1356 = vst.msk [vmem:[%s2325_s9] sm:$0xff] %vm309_vm4, %v1290_v25 }
0x1241   :  { %v1218_v56 = vpop.permute.xlu0 %1217 }
0x1242   :  { %v1220_v33 = vmul.f32 %v1218_v56, %v1201_v7 }
0x1244   :  { %1292 = vrot.lane.b32.xlu0 %v1220_v33, %s1802_s27 }
0x12b6   :  { %v1293_v57 = vpop.permute.xlu0 %1292 }
0x12b7   :  { %v1295_v4 = vsel %vm309_vm4, %v1290_v25, %v1293_v57 }
0x12b8   :  { %v1296_v5 = vpack.c.bf16 %v1295_v4, %v1295_v4 }
0x12ba   :  { %1612 = vmatmul.msk.bf16.vlgmr.msra.gmra.mxu0 %vm394_vm5, %v1296_v5 }
0x1337   :  { %v1309_v59 = vpop.f32.mrf.mxu0 }
0x1338   :  { %v1310_v40 = vadd.f32 %v2216_v52, %v1309_v59 }
0x133a   :  { %1789 = vtanh.f32 %v1310_v40  ;;  %v1613_v43 = vmul.f32 -1.442695, %v1310_v40 }
0x133c   :  { %1791 = vpow2.f32 %v1613_v43 }
0x133f   :  { %v1311_v41 = vpop.f32.mrf.mxu0 }
0x1340   :  { %v1790_v42 = vpop.eup %1789 }
0x1341   :  { %1335 = vrot.lane.b32.xlu1 %v1790_v42, %s1800_s16 }
0x1342   :  { %v1792_v27 = vpop.eup %1791 }
0x1343   :  { %v1316_v45 = vadd.f32 1.0, %v1792_v27 }
0x1345   :  { %1793 = vrcp.f32 %v1316_v45  ;;  %v1328_v58 = vand.u32 2147483648, %v1316_v45  ;;  %vm1322_vm6 = vweird.f32 %v1316_v45 }
0x1349   :  { %964 = vrot.lane.b32.xlu1 %v2171_v35, %s1801_s17  ;;  %v1326_v35 = vand.u32 2147483647, %v1316_v45 }
0x134b   :  { %v1794_v46 = vpop.eup %1793  ;;  %vm1327_vm8 = vcmp.eq.f32.partialorder %v1326_v35, 8.507059e+37 }
0x134c   :  { %v1318_v47 = vmul.f32 %v1794_v46, %v1316_v45  ;;  %vm1323_vm5 = vweird.f32 %v1794_v46 }
0x134d   :  { %vm1324_vm7 = vmor %vm1322_vm6, %vm1323_vm5 }
0x134e   :  { %v1319_v49 = vsub.f32 1.0, %v1318_v47 }
0x1350   :  { %v1320_v50 = vmul.f32 %v1794_v46, %v1319_v49 }
0x1351   :  { %577 = vrot.lane.b32.xlu1 %v2058_v13, %s1801_s17  ;;  %v1329_v13 = vor.u32 1.1754944e-38, %v1328_v58 }
0x1352   :  { %v1321_v52 = vadd.f32 %v1794_v46, %v1320_v50 }
0x1354   :  { %v1325_v44 = vsel %vm1324_vm7, %v1794_v46, %v1321_v52 }
0x1359   :  { %706 = vrot.lane.b32.xlu1 %v2089_v19, %s1801_s17  ;;  %v1330_v19 = vsel %vm1327_vm8, %v1329_v13, %v1325_v44 }
0x135a   :  { %v1333_v0 = vmul.f32 %v1330_v19, %v2228_v20 }
0x13b3   :  { %v1336_v54 = vpop.permute.xlu1 %1335 }
0x13b4   :  { %v1338_v55 = vmul.f32 %v1336_v54, %v1330_v19 }
0x13b6   :  { %1340 = vrot.lane.b32.xlu2 %v1338_v55, %s1800_s16 }
0x13bb   :  { %v965_v60 = vpop.permute.xlu1 %964 }
0x13bc   :  { %968 = vst.msk [vmem:[#allocation3 + $0x20] sm:$0xff] %vm309_vm4, %v965_v60 }
0x13be   :  { %1093 = vrot.lane.b32.xlu2 %v2203_v39, %s1801_s17  ;;  %v1658_v39 = vld [vmem:[%s2326_s6] sm:$0xff] }
0x13bf   :  { %1661 = vmatpush.bf16.msra.mxu3 %v1658_v39  ;;  %1421 = vmatpush.bf16.msrb.mxu1 %v1658_v39 }
0x13c3   :  { %v578_v51 = vpop.permute.xlu1 %577  ;;  %v1374_v8 = vld [vmem:[#allocation3 + $0x20] sm:$0xff] }
0x13c4   :  { %581 = vst.msk [vmem:[#allocation3 + $0x8] sm:$0xff] %vm309_vm4, %v578_v51 }
0x13c6   :  { %1222 = vrot.lane.b32.xlu2 %v1220_v33, %s1801_s17 }
0x13cb   :  { %v707_v61 = vpop.permute.xlu1 %706  ;;  %v1371_v17 = vld [vmem:[#allocation3 + $0x8] sm:$0xff] }
0x13cc   :  { %710 = vst.msk [vmem:[#allocation3 + $0x10] sm:$0xff] %vm309_vm4, %v707_v61 }
0x13ce   :  { %835 = vrot.lane.b32.xlu2 %v2132_v29, %s1801_s17 }
0x13d3   :  { %v1372_v26 = vld [vmem:[#allocation3 + $0x10] sm:$0xff] }
0x1410   :  { %v1341_v2 = vpop.permute.xlu2 %1340 }
0x1411   :  { %v1343_v3 = vadd.f32 %v1341_v2, %v1333_v0 }
0x1413   :  { %1795 = vtanh.f32 %v1343_v3  ;;  %1365 = vrot.lane.b32.xlu1 %v1343_v3, %s1802_s27 }
0x1418   :  { %v1094_v29 = vpop.permute.xlu2 %1093 }
0x1419   :  { %v1796_v6 = vpop.eup %1795  ;;  %1097 = vst.msk [vmem:[#allocation3 + $0x28] sm:$0xff] %vm309_vm4, %v1094_v29 }
0x141a   :  { %1346 = vrot.lane.b32.xlu0 %v1796_v6, %s1800_s16 }
0x1420   :  { %v1223_v10 = vpop.permute.xlu2 %1222  ;;  %v1375_v9 = vld [vmem:[#allocation3 + $0x28] sm:$0xff] }
0x1421   :  { %1226 = vst.msk [vmem:[#allocation3 + $0x30] sm:$0xff] %vm309_vm4, %v1223_v10  ;;  %v1380_v11 = vpack.c.bf16 %v1375_v9, %v1374_v8 }
0x1422   :  { %449 = vrot.lane.b32.xlu0 %v2015_v62, %s1801_s17 }
0x1423   :  { %1626 = vmatmul.msk.bf16.vlgmr.msra.gmra.mxu3 %vm309_vm4, %v1380_v11 }
0x1428   :  { %v836_v12 = vpop.permute.xlu2 %835  ;;  %v1376_v32 = vld [vmem:[#allocation3 + $0x30] sm:$0xff] }
0x1429   :  { %839 = vst.msk [vmem:[#allocation3 + $0x18] sm:$0xff] %vm309_vm4, %v836_v12 }
0x1430   :  { %v1373_v48 = vld [vmem:[#allocation3 + $0x18] sm:$0xff] }
0x1431   :  { %v1379_v7 = vpack.c.bf16 %v1373_v48, %v1372_v26 }
0x1485   :  { %v1366_v53 = vpop.permute.xlu1 %1365 }
0x1486   :  { %1615 = vst.msk [vmem:[%s2328_s10 + $0x8] sm:$0xff] %vm309_vm4, %v1366_v53 }
0x148c   :  { %v1347_v15 = vpop.permute.xlu0 %1346 }
0x148d   :  { %v1349_v16 = vmul.f32 %v1347_v15, %v1330_v19 }
0x148f   :  { %1351 = vrot.lane.b32.xlu0 %v1349_v16, %s1801_s17 }
0x1494   :  { %v450_v1 = vpop.permute.xlu0 %449 }
0x1495   :  { %452 = vst.msk [vmem:[#allocation3] sm:$0xff] %vm309_vm4, %v450_v1 }
0x1497   :  { %1360 = vrot.lane.b32.xlu0 %v2223_v31, %s1802_s27 }
0x149c   :  { %v1370_v62 = vld [vmem:[#allocation3] sm:$0xff] }
0x149d   :  { %v1378_v18 = vpack.c.bf16 %v1371_v17, %v1370_v62 }
0x149f   :  { %1624 = vmatmul.msk.bf16.vlgmr.msrb.gmra.mxu1 %vm309_vm4, %v1378_v18 }
0x14a6   :  { %v1433_v22 = vpop.f32.mrf.mxu3 }
0x14a7   :  { %v1434_v24 = vadd.f32 %v1668_v21, %v1433_v22 }
0x14a9   :  { %1447 = vst [vmem:[%s2329_s8 + $0x20] sm:$0xff] %v1434_v24 }
0x14ae   :  { %v1435_v28 = vpop.f32.mrf.mxu3 }
0x14af   :  { %v1436_v14 = vadd.f32 %v1668_v21, %v1435_v28  ;;  %1625 = vmatmul.msk.bf16.gmra.mxu1 %vm309_vm4, %v1379_v7 }
0x14b1   :  { %1448 = vst [vmem:[%s2329_s8 + $0x28] sm:$0xff] %v1436_v14 }
0x1501   :  { %v1352_v30 = vpop.permute.xlu0 %1351 }
0x1502   :  { %1355 = vst.msk [vmem:[#allocation3 + $0x38] sm:$0xff] %vm309_vm4, %v1352_v30 }
0x1503   :  { %1614 = vst.msk [vmem:[%s2325_s9 + $0x8] sm:$0xff] %vm309_vm4, %v1352_v30 }
0x1509   :  { %v1361_v31 = vpop.permute.xlu0 %1360  ;;  %v1377_v34 = vld [vmem:[#allocation3 + $0x38] sm:$0xff] }
0x150a   :  { %1363 = vst.msk [vmem:[%s2328_s10] sm:$0xff] %vm309_vm4, %v1361_v31  ;;  %v1381_v36 = vpack.c.bf16 %v1377_v34, %v1376_v32 }
0x150c   :  { %1627 = vmatmul.msk.bf16.gmra.mxu3 %vm309_vm4, %v1381_v36 }
0x151c   :  { %v1423_v20 = vpop.f32.mrf.mxu1 }
0x151d   :  { %v1424_v37 = vadd.f32 %v1668_v21, %v1423_v20 }
0x151f   :  { %1443 = vst [vmem:[%s2329_s8] sm:$0xff] %v1424_v37 }
0x1524   :  { %v1425_v38 = vpop.f32.mrf.mxu1 }
0x1525   :  { %v1426_v23 = vadd.f32 %v1668_v21, %v1425_v38 }
0x1527   :  { %1444 = vst [vmem:[%s2329_s8 + $0x8] sm:$0xff] %v1426_v23 }
0x152c   :  { %v1428_v25 = vpop.f32.mrf.mxu1 }
0x152d   :  { %v1429_v56 = vadd.f32 %v1668_v21, %v1428_v25 }
0x152f   :  { %1445 = vst [vmem:[%s2329_s8 + $0x10] sm:$0xff] %v1429_v56 }
0x1534   :  { %v1430_v33 = vpop.f32.mrf.mxu1 }
0x1535   :  { %v1431_v57 = vadd.f32 %v1668_v21, %v1430_v33 }
0x1537   :  { %1446 = vst [vmem:[%s2329_s8 + $0x18] sm:$0xff] %v1431_v57 }
0x158f   :  { %v1438_v4 = vpop.f32.mrf.mxu3 }
0x1590   :  { %v1439_v5 = vadd.f32 %v1668_v21, %v1438_v4 }
0x1592   :  { %1449 = vst [vmem:[%s2329_s8 + $0x30] sm:$0xff] %v1439_v5 }
0x1597   :  { %v1440_v59 = vpop.f32.mrf.mxu3 }
0x1598   :  { %v1441_v40 = vadd.f32 %v1668_v21, %v1440_v59 }
0x159a   :  { %1450 = vst [vmem:[%s2329_s8 + $0x38] sm:$0xff] %v1441_v40 }

</bundles_post_ra>
